<compile_context>
chip_gen: v7x
topology: tpu7x:2x2x1
jax: 0.10.0
libtpu: 0.0.40
codegen_flags: <defaults>
</compile_context>

<pallas_src>
import functools

import jax
import jax.numpy as jnp
from jax.experimental import pallas as pl
from jax.experimental.pallas import tpu as pltpu

MXU_DTYPE = jnp.bfloat16   # MXU operand dtype; accumulation stays f32
NEG_BIG = 1e30


def _layernorm(x, g, b, eps=1e-5):
    mu = jnp.mean(x, axis=-1, keepdims=True)
    var = jnp.mean((x - mu) ** 2, axis=-1, keepdims=True)
    return (x - mu) * jax.lax.rsqrt(var + eps) * g + b


def _erf(x):
    # Abramowitz & Stegun 7.1.26 rational approximation, |error| <= 1.5e-7
    # (effectively f32-exact; far below the bf16 matmul noise elsewhere).
    a1, a2, a3, a4, a5 = 0.254829592, -0.284496736, 1.421413741, -1.453152027, 1.061405429
    p = 0.3275911
    s = jnp.where(x >= 0.0, 1.0, -1.0)
    z = jnp.abs(x)
    t = 1.0 / (1.0 + p * z)
    poly = ((((a5 * t + a4) * t + a3) * t + a2) * t + a1) * t
    return s * (1.0 - poly * jnp.exp(-z * z))


def _gelu_exact(x):
    # PyTorch nn.GELU() default: exact erf form.
    return 0.5 * x * (1.0 + _erf(x * 0.7071067811865476))


def _mm(a, b):
    # MXU matmul with bf16 operands, f32 accumulation.
    return jnp.dot(a.astype(MXU_DTYPE), b.astype(MXU_DTYPE),
                   preferred_element_type=jnp.float32)


def encoder_kernel(
    x_ref, edge_ref, bias_ref,
    ln1_g, ln1_b, wlr, blr, we, seg_att,
    pw, pb, ln2_g, ln2_b, w1, b1, w2, b2,
    out_ref,
    *, N, D, H,
):
    C = D                      # GATv2Conv out_channels == dim
    HC = H * C
    layer = pl.program_id(0)

    # First grid step: initialize the resident accumulator from the input.
    @pl.when(layer == 0)
    def _():
        out_ref[...] = x_ref[...]

    x = out_ref[...]

    # ---- attention block: Residual(PreLN(Linear(GATv2Conv(.)))) ----
    h = _layernorm(x, ln1_g[...], ln1_b[...])
    xlr = _mm(h, wlr[...]) + blr[...]                   # [N, 2*HC] (one 128-lane matmul)
    xl = xlr[:, :HC]                                    # source projection  [N, HC]
    xr = xlr[:, HC:]                                    # target projection  [N, HC]
    e = _mm(edge_ref[...], we[...])                     # edge projection    [N*N, HC]

    # GATv2 pre-activation for all heads: x_i + x_j + e_ij, leaky_relu(0.2)
    t = xr[:, None, :] + xl[None, :, :] + e.reshape(N, N, HC)   # [N_dst, N_src, HC]
    u = jnp.where(t > 0, t, 0.2 * t)

    # Per-head scores with `att` pre-folded into the one-hot reduce matrix:
    # one MXU matmul, no extra VPU multiply.
    sc = _mm(u.reshape(N * N, HC), seg_att[...])        # [N*N, H]
    sc = sc.reshape(N, N, H)

    bias = bias_ref[...]                                # [N_dst, N_src] additive mask
    # isolated-target indicator (no incoming edges -> zero message), derived in-kernel
    deg = (jnp.max(bias, axis=-1, keepdims=True) > -1.0).astype(jnp.float32)  # [N, 1]

    proj = pb[...]                                      # folded GAT bias + proj bias [1, D]
    pw_all = pw[...]                                    # [HC, D]
    for hd in range(H):                                 # static loop, H small
        # dense [N_dst, N_src] layout: source nodes on the lane axis
        s_h = sc[:, :, hd] + bias
        m = jnp.max(s_h, axis=-1, keepdims=True)
        p = jnp.exp(s_h - m)
        denom = jnp.sum(p, axis=-1, keepdims=True)
        alpha = p * pl.reciprocal(denom, approx=True) * deg      # [N_dst, N_src]
        # aggregation + head mixing on the MXU
        gat_h = _mm(alpha, xl[:, hd * C:(hd + 1) * C])            # [N_dst, C]
        proj = proj + _mm(gat_h, pw_all[hd * C:(hd + 1) * C, :])  # [N_dst, D]
    x = x + proj                                        # residual

    # ---- feed-forward block: Residual(PreLN(MLP)) ----
    h2 = _layernorm(x, ln2_g[...], ln2_b[...])
    z = _gelu_exact(_mm(h2, w1[...]) + b1[...])
    y = _mm(z, w2[...]) + b2[...]
    out_ref[...] = x + y


def gat_transformer_encoder(x, edge_index, edge_attr, params, *, N, D, H, De, Dm):
    """Forward of GATTransformerEncoder (eval mode) as a single fused pallas_call."""
    depth = len(params)
    C = D
    HC = H * C

    # ---- densify the sparse graph (plain-JAX glue, done once) ----
    src, dst = edge_index[0], edge_index[1]
    mask = jnp.zeros((N, N), jnp.float32).at[dst, src].set(1.0)   # adj[i,j]=1 iff edge j->i
    edge_dense = jnp.zeros((N, N, De), jnp.float32).at[dst, src].set(edge_attr)
    edge_flat = edge_dense.reshape(N * N, De).astype(MXU_DTYPE)
    attn_bias = (mask - 1.0) * NEG_BIG                            # lane-dense [N, N]

    # ---- stack per-layer params along a leading depth axis ----
    stacked = [jnp.stack([lp[i] for lp in params], axis=0)
               for i in range(len(params[0]))]
    (ln1_g, ln1_b, wl, bl, wr, br, we, att, gat_b, pw, pb,
     ln2_g, ln2_b, w1, b1, w2, b2) = stacked

    # Fold the GATv2 output bias into the post-attention projection bias
    # (use bf16-rounded pw so the fold matches the in-kernel matmul operands).
    pw_bf = pw.astype(MXU_DTYPE)
    pb = pb + jnp.einsum("lok,lkd->lod", gat_b, pw_bf.astype(jnp.float32))

    # Concat source/target projection weights -> one 128-lane matmul per layer.
    wlr = jnp.concatenate([wl, wr], axis=-1).astype(MXU_DTYPE)    # [L, D, 2*HC]
    blr = jnp.concatenate([bl, br], axis=-1)                      # [L, 1, 2*HC]

    # Fold the attention vector into the per-head one-hot reduction matrix.
    seg = (jnp.arange(HC)[:, None] // C == jnp.arange(H)[None, :]).astype(jnp.float32)
    seg_att = (att.reshape(depth, HC, 1) * seg[None]).astype(MXU_DTYPE)   # [L, HC, H]

    # bf16 MXU-operand weights (halves their DMA bytes / VMEM footprint).
    we = we.astype(MXU_DTYPE)
    w1 = w1.astype(MXU_DTYPE)
    w2 = w2.astype(MXU_DTYPE)

    layer_inputs = (ln1_g, ln1_b, wlr, blr, we, seg_att,
                    pw_bf, pb, ln2_g, ln2_b, w1, b1, w2, b2)

    def const_spec(a):        # resident in VMEM across the whole depth grid
        return pl.BlockSpec(a.shape, lambda l, nd=a.ndim: (0,) * nd)

    def per_layer_spec(a):    # select layer l's slab (leading depth axis squeezed)
        return pl.BlockSpec((None,) + a.shape[1:],
                            lambda l, nd=a.ndim: (l,) + (0,) * (nd - 1))

    in_specs = ([const_spec(x), const_spec(edge_flat), const_spec(attn_bias)]
                + [per_layer_spec(p) for p in layer_inputs])

    kernel = functools.partial(encoder_kernel, N=N, D=D, H=H)
    return pl.pallas_call(
        kernel,
        out_shape=jax.ShapeDtypeStruct((N, D), jnp.float32),
        grid_spec=pltpu.PrefetchScalarGridSpec(
            num_scalar_prefetch=0,
            grid=(depth,),
            in_specs=in_specs,
            out_specs=pl.BlockSpec((N, D), lambda l: (0, 0)),
        ),
        compiler_params=pltpu.CompilerParams(
            dimension_semantics=("arbitrary",),
        ),
    )(x, edge_flat, attn_bias, *layer_inputs)


def init_params(key, depth, D, H, De, Dm):
    """Deterministic synthetic parameter init (shapes follow the PyTorch module)."""
    layers = []
    s = 0.1
    for l in range(depth):
        k = jax.random.fold_in(key, l)
        ks = jax.random.split(k, 8)
        layer = (
            jnp.ones((1, D), jnp.float32), jnp.zeros((1, D), jnp.float32),           # ln1
            s * jax.random.normal(ks[0], (D, H * D), jnp.float32),                    # lin_l W
            s * jax.random.normal(ks[1], (1, H * D), jnp.float32),                    # lin_l b
            s * jax.random.normal(ks[2], (D, H * D), jnp.float32),                    # lin_r W
            s * jax.random.normal(ks[3], (1, H * D), jnp.float32),                    # lin_r b
            s * jax.random.normal(ks[4], (De, H * D), jnp.float32),                   # lin_edge W
            s * jax.random.normal(ks[5], (1, H * D), jnp.float32),                    # att vector
            jnp.zeros((1, H * D), jnp.float32),                                       # GAT output bias
            s * jax.random.normal(ks[6], (H * D, D), jnp.float32),                    # post-attn proj W
            jnp.zeros((1, D), jnp.float32),                                           # post-attn proj b
            jnp.ones((1, D), jnp.float32), jnp.zeros((1, D), jnp.float32),            # ln2
            s * jax.random.normal(ks[7], (D, Dm), jnp.float32),                       # mlp W1
            jnp.zeros((1, Dm), jnp.float32),                                          # mlp b1
            s * jax.random.normal(jax.random.fold_in(k, 99), (Dm, D), jnp.float32),   # mlp W2
            jnp.zeros((1, D), jnp.float32),                                           # mlp b2
        )
        layers.append(layer)
    return layers


if __name__ == "__main__":
    N, D, H, De, Dm, depth = 8, 32, 2, 8, 64, 2

    key = jax.random.PRNGKey(0)
    kx, ke, kp = jax.random.split(key, 3)

    # Graph: each node i receives edges from (i+1)%N, (i+2)%N, (i+3)%N  (E=24)
    dst = jnp.repeat(jnp.arange(N), 3)
    src = (dst + jnp.tile(jnp.arange(1, 4), N)) % N
    edge_index = jnp.stack([src, dst]).astype(jnp.int32)   # [2, E] (PyG: [source; target])
    E = edge_index.shape[1]

    x = jax.random.normal(kx, (N, D), jnp.float32)
    edge_attr = jax.random.normal(ke, (E, De), jnp.float32)
    params = init_params(kp, depth, D, H, De, Dm)

    out = gat_transformer_encoder(x, edge_index, edge_attr, params,
                                  N=N, D=D, H=H, De=De, Dm=Dm)
    jax.block_until_ready(out)
    assert out.shape == (N, D)
    assert bool(jnp.all(jnp.isfinite(out)))
    print("KERNEL_OK")
</pallas_src>

<mosaic_0001>
module attributes {stable_mosaic.version = 11 : i64} {
  func.func @encoder_kernel(%arg0: i32, %arg1: memref<8x32xf32, #tpu.memory_space<vmem>>, %arg2: memref<64x8xbf16, #tpu.memory_space<vmem>>, %arg3: memref<8x8xf32, #tpu.memory_space<vmem>>, %arg4: memref<1x1x32xf32, #tpu.memory_space<vmem>>, %arg5: memref<1x1x32xf32, #tpu.memory_space<vmem>>, %arg6: memref<1x32x128xbf16, #tpu.memory_space<vmem>>, %arg7: memref<1x1x128xf32, #tpu.memory_space<vmem>>, %arg8: memref<1x8x64xbf16, #tpu.memory_space<vmem>>, %arg9: memref<1x64x2xbf16, #tpu.memory_space<vmem>>, %arg10: memref<1x64x32xbf16, #tpu.memory_space<vmem>>, %arg11: memref<1x1x32xf32, #tpu.memory_space<vmem>>, %arg12: memref<1x1x32xf32, #tpu.memory_space<vmem>>, %arg13: memref<1x1x32xf32, #tpu.memory_space<vmem>>, %arg14: memref<1x32x64xbf16, #tpu.memory_space<vmem>>, %arg15: memref<1x1x64xf32, #tpu.memory_space<vmem>>, %arg16: memref<1x64x32xbf16, #tpu.memory_space<vmem>>, %arg17: memref<1x1x32xf32, #tpu.memory_space<vmem>>, %arg18: memref<8x32xf32, #tpu.memory_space<vmem>>) attributes {dimension_semantics = [#tpu.dimension_semantics<arbitrary>], iteration_bounds = array<i64: 2>, scalar_prefetch = 0 : i64, scratch_operands = 0 : i64, tpu.core_type = #tpu.core_type<tc>, window_params = [{pipeline_mode = #tpu.pipeline_mode<synchronous>, transform_indices = @transform_0, window_bounds = array<i64: 8, 32>}, {pipeline_mode = #tpu.pipeline_mode<synchronous>, transform_indices = @transform_1, window_bounds = array<i64: 64, 8>}, {pipeline_mode = #tpu.pipeline_mode<synchronous>, transform_indices = @transform_2, window_bounds = array<i64: 8, 8>}, {transform_indices = @transform_3, window_bounds = array<i64: 1, 1, 32>}, {transform_indices = @transform_4, window_bounds = array<i64: 1, 1, 32>}, {transform_indices = @transform_5, window_bounds = array<i64: 1, 32, 128>}, {transform_indices = @transform_6, window_bounds = array<i64: 1, 1, 128>}, {transform_indices = @transform_7, window_bounds = array<i64: 1, 8, 64>}, {transform_indices = @transform_8, window_bounds = array<i64: 1, 64, 2>}, {transform_indices = @transform_9, window_bounds = array<i64: 1, 64, 32>}, {transform_indices = @transform_10, window_bounds = array<i64: 1, 1, 32>}, {transform_indices = @transform_11, window_bounds = array<i64: 1, 1, 32>}, {transform_indices = @transform_12, window_bounds = array<i64: 1, 1, 32>}, {transform_indices = @transform_13, window_bounds = array<i64: 1, 32, 64>}, {transform_indices = @transform_14, window_bounds = array<i64: 1, 1, 64>}, {transform_indices = @transform_15, window_bounds = array<i64: 1, 64, 32>}, {transform_indices = @transform_16, window_bounds = array<i64: 1, 1, 32>}, {pipeline_mode = #tpu.pipeline_mode<synchronous>, transform_indices = @transform_17, window_bounds = array<i64: 8, 32>}]} {
    %c0_i32 = arith.constant 0 : i32
    %0 = arith.cmpi eq, %arg0, %c0_i32 : i32
    %1 = arith.extui %0 : i1 to i32
    %c0_i32_0 = arith.constant 0 : i32
    %2 = arith.cmpi ne, %1, %c0_i32_0 : i32
    scf.if %2 {
      %c0_92 = arith.constant 0 : index
      %c0_93 = arith.constant 0 : index
      %206 = vector.load %arg1[%c0_92, %c0_93] : memref<8x32xf32, #tpu.memory_space<vmem>>, vector<8x32xf32>
      %c0_94 = arith.constant 0 : index
      %c0_95 = arith.constant 0 : index
      %207 = vector.load %arg18[%c0_94, %c0_95] : memref<8x32xf32, #tpu.memory_space<vmem>>, vector<8x32xf32>
      tpu.vector_store %arg18[%c0_94, %c0_95], %206 {strides = array<i32>} : memref<8x32xf32, #tpu.memory_space<vmem>>, vector<8x32xf32>,
    } else {
    }
    %c0 = arith.constant 0 : index
    %c0_1 = arith.constant 0 : index
    %3 = vector.load %arg18[%c0, %c0_1] : memref<8x32xf32, #tpu.memory_space<vmem>>, vector<8x32xf32>
    %c0_2 = arith.constant 0 : index
    %c0_3 = arith.constant 0 : index
    %c0_4 = arith.constant 0 : index
    %4 = vector.load %arg4[%c0_2, %c0_3, %c0_4] : memref<1x1x32xf32, #tpu.memory_space<vmem>>, vector<1x1x32xf32>
    %5 = vector.shape_cast %4 : vector<1x1x32xf32> to vector<1x32xf32>
    %c0_5 = arith.constant 0 : index
    %c0_6 = arith.constant 0 : index
    %c0_7 = arith.constant 0 : index
    %6 = vector.load %arg5[%c0_5, %c0_6, %c0_7] : memref<1x1x32xf32, #tpu.memory_space<vmem>>, vector<1x1x32xf32>
    %7 = vector.shape_cast %6 : vector<1x1x32xf32> to vector<1x32xf32>
    %cst = arith.constant dense<0.000000e+00> : vector<8xf32>
    %8 = vector.multi_reduction <add>, %3, %cst [1] : vector<8x32xf32> to vector<8xf32>
    %9 = vector.shape_cast %8 : vector<8xf32> to vector<8x1xf32>
    %cst_8 = arith.constant 3.200000e+01 : f32
    %10 = vector.broadcast %cst_8 : f32 to vector<8x1xf32>
    %11 = arith.divf %9, %10 : vector<8x1xf32>
    %12 = vector.broadcast %11 : vector<8x1xf32> to vector<8x32xf32>
    %13 = arith.subf %3, %12 : vector<8x32xf32>
    %14 = arith.mulf %13, %13 : vector<8x32xf32>
    %cst_9 = arith.constant dense<0.000000e+00> : vector<8xf32>
    %15 = vector.multi_reduction <add>, %14, %cst_9 [1] : vector<8x32xf32> to vector<8xf32>
    %16 = vector.shape_cast %15 : vector<8xf32> to vector<8x1xf32>
    %cst_10 = arith.constant 3.200000e+01 : f32
    %17 = vector.broadcast %cst_10 : f32 to vector<8x1xf32>
    %18 = arith.divf %16, %17 : vector<8x1xf32>
    %19 = vector.broadcast %11 : vector<8x1xf32> to vector<8x32xf32>
    %20 = arith.subf %3, %19 : vector<8x32xf32>
    %cst_11 = arith.constant 9.99999974E-6 : f32
    %21 = vector.broadcast %cst_11 : f32 to vector<8x1xf32>
    %22 = arith.addf %18, %21 : vector<8x1xf32>
    %23 = math.rsqrt %22 : vector<8x1xf32>
    %24 = vector.broadcast %23 : vector<8x1xf32> to vector<8x32xf32>
    %25 = arith.mulf %20, %24 : vector<8x32xf32>
    %26 = vector.broadcast %5 : vector<1x32xf32> to vector<8x32xf32>
    %27 = arith.mulf %25, %26 : vector<8x32xf32>
    %28 = vector.broadcast %7 : vector<1x32xf32> to vector<8x32xf32>
    %29 = arith.addf %27, %28 : vector<8x32xf32>
    %c0_12 = arith.constant 0 : index
    %c0_13 = arith.constant 0 : index
    %c0_14 = arith.constant 0 : index
    %30 = vector.load %arg6[%c0_12, %c0_13, %c0_14] : memref<1x32x128xbf16, #tpu.memory_space<vmem>>, vector<1x32x128xbf16>
    %31 = vector.shape_cast %30 : vector<1x32x128xbf16> to vector<32x128xbf16>
    %32 = arith.truncf %29 : vector<8x32xf32> to vector<8x32xbf16>
    %cst_15 = arith.constant dense<0.000000e+00> : vector<8x128xf32>
    %33 = tpu.matmul %32, %31, %cst_15 {dimension_numbers = #tpu.dot_dimension_numbers<[1], [0], [0], [1], [0, 0, 1, 1], [], []>} : vector<8x32xbf16>, vector<32x128xbf16>, vector<8x128xf32> -> vector<8x128xf32>
    %c0_16 = arith.constant 0 : index
    %c0_17 = arith.constant 0 : index
    %c0_18 = arith.constant 0 : index
    %34 = vector.load %arg7[%c0_16, %c0_17, %c0_18] : memref<1x1x128xf32, #tpu.memory_space<vmem>>, vector<1x1x128xf32>
    %35 = vector.shape_cast %34 : vector<1x1x128xf32> to vector<1x128xf32>
    %36 = vector.broadcast %35 : vector<1x128xf32> to vector<8x128xf32>
    %37 = arith.addf %33, %36 : vector<8x128xf32>
    %38 = vector.extract_strided_slice %37 {offsets = [0, 0], sizes = [8, 64], strides = [1, 1]} : vector<8x128xf32> to vector<8x64xf32>
    %39 = vector.extract_strided_slice %37 {offsets = [0, 64], sizes = [8, 64], strides = [1, 1]} : vector<8x128xf32> to vector<8x64xf32>
    %c0_19 = arith.constant 0 : index
    %c0_20 = arith.constant 0 : index
    %40 = vector.load %arg2[%c0_19, %c0_20] : memref<64x8xbf16, #tpu.memory_space<vmem>>, vector<64x8xbf16>
    %c0_21 = arith.constant 0 : index
    %c0_22 = arith.constant 0 : index
    %c0_23 = arith.constant 0 : index
    %41 = vector.load %arg8[%c0_21, %c0_22, %c0_23] : memref<1x8x64xbf16, #tpu.memory_space<vmem>>, vector<1x8x64xbf16>
    %42 = vector.shape_cast %41 : vector<1x8x64xbf16> to vector<8x64xbf16>
    %cst_24 = arith.constant dense<0.000000e+00> : vector<64x64xf32>
    %43 = tpu.matmul %40, %42, %cst_24 {dimension_numbers = #tpu.dot_dimension_numbers<[1], [0], [0], [1], [0, 0, 1, 1], [], []>} : vector<64x8xbf16>, vector<8x64xbf16>, vector<64x64xf32> -> vector<64x64xf32>
    %44 = vector.shape_cast %39 : vector<8x64xf32> to vector<8x1x64xf32>
    %45 = vector.shape_cast %38 : vector<8x64xf32> to vector<1x8x64xf32>
    %46 = vector.broadcast %44 : vector<8x1x64xf32> to vector<8x8x64xf32>
    %47 = vector.broadcast %45 : vector<1x8x64xf32> to vector<8x8x64xf32>
    %48 = arith.addf %46, %47 : vector<8x8x64xf32>
    %49 = vector.shape_cast %43 : vector<64x64xf32> to vector<8x8x64xf32>
    %50 = arith.addf %48, %49 : vector<8x8x64xf32>
    %cst_25 = arith.constant 0.000000e+00 : f32
    %51 = vector.broadcast %cst_25 : f32 to vector<8x8x64xf32>
    %52 = arith.cmpf ogt, %50, %51 : vector<8x8x64xf32>
    %cst_26 = arith.constant 2.000000e-01 : f32
    %53 = vector.broadcast %cst_26 : f32 to vector<8x8x64xf32>
    %54 = arith.mulf %53, %50 : vector<8x8x64xf32>
    %55 = arith.select %52, %50, %54 : vector<8x8x64xi1>, vector<8x8x64xf32>
    %56 = vector.shape_cast %55 : vector<8x8x64xf32> to vector<64x64xf32>
    %c0_27 = arith.constant 0 : index
    %c0_28 = arith.constant 0 : index
    %c0_29 = arith.constant 0 : index
    %57 = vector.load %arg9[%c0_27, %c0_28, %c0_29] : memref<1x64x2xbf16, #tpu.memory_space<vmem>>, vector<1x64x2xbf16>
    %58 = vector.shape_cast %57 : vector<1x64x2xbf16> to vector<64x2xbf16>
    %59 = arith.truncf %56 : vector<64x64xf32> to vector<64x64xbf16>
    %cst_30 = arith.constant dense<0.000000e+00> : vector<64x2xf32>
    %60 = tpu.matmul %59, %58, %cst_30 {dimension_numbers = #tpu.dot_dimension_numbers<[1], [0], [0], [1], [0, 0, 1, 1], [], []>} : vector<64x64xbf16>, vector<64x2xbf16>, vector<64x2xf32> -> vector<64x2xf32>
    %61 = vector.shape_cast %60 : vector<64x2xf32> to vector<8x8x2xf32>
    %c0_31 = arith.constant 0 : index
    %c0_32 = arith.constant 0 : index
    %62 = vector.load %arg3[%c0_31, %c0_32] : memref<8x8xf32, #tpu.memory_space<vmem>>, vector<8x8xf32>
    %cst_33 = arith.constant dense<0xFF800000> : vector<8xf32>
    %63 = vector.multi_reduction <maximumf>, %62, %cst_33 [1] : vector<8x8xf32> to vector<8xf32>
    %64 = vector.shape_cast %63 : vector<8xf32> to vector<8x1xf32>
    %cst_34 = arith.constant -1.000000e+00 : f32
    %65 = vector.broadcast %cst_34 : f32 to vector<8x1xf32>
    %66 = arith.cmpf ogt, %64, %65 : vector<8x1xf32>
    %67 = arith.extui %66 : vector<8x1xi1> to vector<8x1xi32>
    %68 = arith.sitofp %67 : vector<8x1xi32> to vector<8x1xf32>
    %c0_35 = arith.constant 0 : index
    %c0_36 = arith.constant 0 : index
    %c0_37 = arith.constant 0 : index
    %69 = vector.load %arg11[%c0_35, %c0_36, %c0_37] : memref<1x1x32xf32, #tpu.memory_space<vmem>>, vector<1x1x32xf32>
    %70 = vector.shape_cast %69 : vector<1x1x32xf32> to vector<1x32xf32>
    %c0_38 = arith.constant 0 : index
    %c0_39 = arith.constant 0 : index
    %c0_40 = arith.constant 0 : index
    %71 = vector.load %arg10[%c0_38, %c0_39, %c0_40] : memref<1x64x32xbf16, #tpu.memory_space<vmem>>, vector<1x64x32xbf16>
    %72 = vector.shape_cast %71 : vector<1x64x32xbf16> to vector<64x32xbf16>
    %73 = vector.extract_strided_slice %61 {offsets = [0, 0, 0], sizes = [8, 8, 1], strides = [1, 1, 1]} : vector<8x8x2xf32> to vector<8x8x1xf32>
    %74 = vector.shape_cast %73 : vector<8x8x1xf32> to vector<8x8xf32>
    %75 = arith.addf %74, %62 : vector<8x8xf32>
    %cst_41 = arith.constant dense<0xFF800000> : vector<8xf32>
    %76 = vector.multi_reduction <maximumf>, %75, %cst_41 [1] : vector<8x8xf32> to vector<8xf32>
    %77 = vector.shape_cast %76 : vector<8xf32> to vector<8x1xf32>
    %78 = vector.broadcast %77 : vector<8x1xf32> to vector<8x8xf32>
    %79 = arith.subf %75, %78 : vector<8x8xf32>
    %80 = math.exp %79 : vector<8x8xf32>
    %cst_42 = arith.constant dense<0.000000e+00> : vector<8xf32>
    %81 = vector.multi_reduction <add>, %80, %cst_42 [1] : vector<8x8xf32> to vector<8xf32>
    %82 = vector.shape_cast %81 : vector<8xf32> to vector<8x1xf32>
    %83 = tpu.reciprocal %82 {approx = true} : vector<8x1xf32> -> vector<8x1xf32>
    %84 = vector.broadcast %83 : vector<8x1xf32> to vector<8x8xf32>
    %85 = arith.mulf %80, %84 : vector<8x8xf32>
    %86 = vector.broadcast %68 : vector<8x1xf32> to vector<8x8xf32>
    %87 = arith.mulf %85, %86 : vector<8x8xf32>
    %88 = vector.extract_strided_slice %38 {offsets = [0, 0], sizes = [8, 32], strides = [1, 1]} : vector<8x64xf32> to vector<8x32xf32>
    %89 = arith.truncf %87 : vector<8x8xf32> to vector<8x8xbf16>
    %90 = arith.truncf %88 : vector<8x32xf32> to vector<8x32xbf16>
    %cst_43 = arith.constant dense<0.000000e+00> : vector<8x32xf32>
    %91 = tpu.matmul %89, %90, %cst_43 {dimension_numbers = #tpu.dot_dimension_numbers<[1], [0], [0], [1], [0, 0, 1, 1], [], []>} : vector<8x8xbf16>, vector<8x32xbf16>, vector<8x32xf32> -> vector<8x32xf32>
    %92 = vector.extract_strided_slice %72 {offsets = [0, 0], sizes = [32, 32], strides = [1, 1]} : vector<64x32xbf16> to vector<32x32xbf16>
    %93 = arith.truncf %91 : vector<8x32xf32> to vector<8x32xbf16>
    %cst_44 = arith.constant dense<0.000000e+00> : vector<8x32xf32>
    %94 = tpu.matmul %93, %92, %cst_44 {dimension_numbers = #tpu.dot_dimension_numbers<[1], [0], [0], [1], [0, 0, 1, 1], [], []>} : vector<8x32xbf16>, vector<32x32xbf16>, vector<8x32xf32> -> vector<8x32xf32>
    %95 = vector.broadcast %70 : vector<1x32xf32> to vector<8x32xf32>
    %96 = arith.addf %95, %94 : vector<8x32xf32>
    %97 = vector.extract_strided_slice %61 {offsets = [0, 0, 1], sizes = [8, 8, 1], strides = [1, 1, 1]} : vector<8x8x2xf32> to vector<8x8x1xf32>
    %98 = vector.shape_cast %97 : vector<8x8x1xf32> to vector<8x8xf32>
    %99 = arith.addf %98, %62 : vector<8x8xf32>
    %cst_45 = arith.constant dense<0xFF800000> : vector<8xf32>
    %100 = vector.multi_reduction <maximumf>, %99, %cst_45 [1] : vector<8x8xf32> to vector<8xf32>
    %101 = vector.shape_cast %100 : vector<8xf32> to vector<8x1xf32>
    %102 = vector.broadcast %101 : vector<8x1xf32> to vector<8x8xf32>
    %103 = arith.subf %99, %102 : vector<8x8xf32>
    %104 = math.exp %103 : vector<8x8xf32>
    %cst_46 = arith.constant dense<0.000000e+00> : vector<8xf32>
    %105 = vector.multi_reduction <add>, %104, %cst_46 [1] : vector<8x8xf32> to vector<8xf32>
    %106 = vector.shape_cast %105 : vector<8xf32> to vector<8x1xf32>
    %107 = tpu.reciprocal %106 {approx = true} : vector<8x1xf32> -> vector<8x1xf32>
    %108 = vector.broadcast %107 : vector<8x1xf32> to vector<8x8xf32>
    %109 = arith.mulf %104, %108 : vector<8x8xf32>
    %110 = vector.broadcast %68 : vector<8x1xf32> to vector<8x8xf32>
    %111 = arith.mulf %109, %110 : vector<8x8xf32>
    %112 = vector.extract_strided_slice %38 {offsets = [0, 32], sizes = [8, 32], strides = [1, 1]} : vector<8x64xf32> to vector<8x32xf32>
    %113 = arith.truncf %111 : vector<8x8xf32> to vector<8x8xbf16>
    %114 = arith.truncf %112 : vector<8x32xf32> to vector<8x32xbf16>
    %cst_47 = arith.constant dense<0.000000e+00> : vector<8x32xf32>
    %115 = tpu.matmul %113, %114, %cst_47 {dimension_numbers = #tpu.dot_dimension_numbers<[1], [0], [0], [1], [0, 0, 1, 1], [], []>} : vector<8x8xbf16>, vector<8x32xbf16>, vector<8x32xf32> -> vector<8x32xf32>
    %116 = vector.extract_strided_slice %72 {offsets = [32, 0], sizes = [32, 32], strides = [1, 1]} : vector<64x32xbf16> to vector<32x32xbf16>
    %117 = arith.truncf %115 : vector<8x32xf32> to vector<8x32xbf16>
    %cst_48 = arith.constant dense<0.000000e+00> : vector<8x32xf32>
    %118 = tpu.matmul %117, %116, %cst_48 {dimension_numbers = #tpu.dot_dimension_numbers<[1], [0], [0], [1], [0, 0, 1, 1], [], []>} : vector<8x32xbf16>, vector<32x32xbf16>, vector<8x32xf32> -> vector<8x32xf32>
    %119 = arith.addf %96, %118 : vector<8x32xf32>
    %120 = arith.addf %3, %119 : vector<8x32xf32>
    %c0_49 = arith.constant 0 : index
    %c0_50 = arith.constant 0 : index
    %c0_51 = arith.constant 0 : index
    %121 = vector.load %arg12[%c0_49, %c0_50, %c0_51] : memref<1x1x32xf32, #tpu.memory_space<vmem>>, vector<1x1x32xf32>
    %122 = vector.shape_cast %121 : vector<1x1x32xf32> to vector<1x32xf32>
    %c0_52 = arith.constant 0 : index
    %c0_53 = arith.constant 0 : index
    %c0_54 = arith.constant 0 : index
    %123 = vector.load %arg13[%c0_52, %c0_53, %c0_54] : memref<1x1x32xf32, #tpu.memory_space<vmem>>, vector<1x1x32xf32>
    %124 = vector.shape_cast %123 : vector<1x1x32xf32> to vector<1x32xf32>
    %cst_55 = arith.constant dense<0.000000e+00> : vector<8xf32>
    %125 = vector.multi_reduction <add>, %120, %cst_55 [1] : vector<8x32xf32> to vector<8xf32>
    %126 = vector.shape_cast %125 : vector<8xf32> to vector<8x1xf32>
    %cst_56 = arith.constant 3.200000e+01 : f32
    %127 = vector.broadcast %cst_56 : f32 to vector<8x1xf32>
    %128 = arith.divf %126, %127 : vector<8x1xf32>
    %129 = vector.broadcast %128 : vector<8x1xf32> to vector<8x32xf32>
    %130 = arith.subf %120, %129 : vector<8x32xf32>
    %131 = arith.mulf %130, %130 : vector<8x32xf32>
    %cst_57 = arith.constant dense<0.000000e+00> : vector<8xf32>
    %132 = vector.multi_reduction <add>, %131, %cst_57 [1] : vector<8x32xf32> to vector<8xf32>
    %133 = vector.shape_cast %132 : vector<8xf32> to vector<8x1xf32>
    %cst_58 = arith.constant 3.200000e+01 : f32
    %134 = vector.broadcast %cst_58 : f32 to vector<8x1xf32>
    %135 = arith.divf %133, %134 : vector<8x1xf32>
    %136 = vector.broadcast %128 : vector<8x1xf32> to vector<8x32xf32>
    %137 = arith.subf %120, %136 : vector<8x32xf32>
    %cst_59 = arith.constant 9.99999974E-6 : f32
    %138 = vector.broadcast %cst_59 : f32 to vector<8x1xf32>
    %139 = arith.addf %135, %138 : vector<8x1xf32>
    %140 = math.rsqrt %139 : vector<8x1xf32>
    %141 = vector.broadcast %140 : vector<8x1xf32> to vector<8x32xf32>
    %142 = arith.mulf %137, %141 : vector<8x32xf32>
    %143 = vector.broadcast %122 : vector<1x32xf32> to vector<8x32xf32>
    %144 = arith.mulf %142, %143 : vector<8x32xf32>
    %145 = vector.broadcast %124 : vector<1x32xf32> to vector<8x32xf32>
    %146 = arith.addf %144, %145 : vector<8x32xf32>
    %c0_60 = arith.constant 0 : index
    %c0_61 = arith.constant 0 : index
    %c0_62 = arith.constant 0 : index
    %147 = vector.load %arg14[%c0_60, %c0_61, %c0_62] : memref<1x32x64xbf16, #tpu.memory_space<vmem>>, vector<1x32x64xbf16>
    %148 = vector.shape_cast %147 : vector<1x32x64xbf16> to vector<32x64xbf16>
    %149 = arith.truncf %146 : vector<8x32xf32> to vector<8x32xbf16>
    %cst_63 = arith.constant dense<0.000000e+00> : vector<8x64xf32>
    %150 = tpu.matmul %149, %148, %cst_63 {dimension_numbers = #tpu.dot_dimension_numbers<[1], [0], [0], [1], [0, 0, 1, 1], [], []>} : vector<8x32xbf16>, vector<32x64xbf16>, vector<8x64xf32> -> vector<8x64xf32>
    %c0_64 = arith.constant 0 : index
    %c0_65 = arith.constant 0 : index
    %c0_66 = arith.constant 0 : index
    %151 = vector.load %arg15[%c0_64, %c0_65, %c0_66] : memref<1x1x64xf32, #tpu.memory_space<vmem>>, vector<1x1x64xf32>
    %152 = vector.shape_cast %151 : vector<1x1x64xf32> to vector<1x64xf32>
    %153 = vector.broadcast %152 : vector<1x64xf32> to vector<8x64xf32>
    %154 = arith.addf %150, %153 : vector<8x64xf32>
    %cst_67 = arith.constant 5.000000e-01 : f32
    %155 = vector.broadcast %cst_67 : f32 to vector<8x64xf32>
    %156 = arith.mulf %155, %154 : vector<8x64xf32>
    %cst_68 = arith.constant 0.707106769 : f32
    %157 = vector.broadcast %cst_68 : f32 to vector<8x64xf32>
    %158 = arith.mulf %154, %157 : vector<8x64xf32>
    %cst_69 = arith.constant 0.000000e+00 : f32
    %159 = vector.broadcast %cst_69 : f32 to vector<8x64xf32>
    %160 = arith.cmpf oge, %158, %159 : vector<8x64xf32>
    %cst_70 = arith.constant 1.000000e+00 : f32
    %cst_71 = arith.constant -1.000000e+00 : f32
    %161 = vector.broadcast %cst_70 : f32 to vector<8x64xf32>
    %162 = vector.broadcast %cst_71 : f32 to vector<8x64xf32>
    %163 = arith.select %160, %161, %162 : vector<8x64xi1>, vector<8x64xf32>
    %164 = math.absf %158 : vector<8x64xf32>
    %cst_72 = arith.constant 0.327591091 : f32
    %165 = vector.broadcast %cst_72 : f32 to vector<8x64xf32>
    %166 = arith.mulf %165, %164 : vector<8x64xf32>
    %cst_73 = arith.constant 1.000000e+00 : f32
    %167 = vector.broadcast %cst_73 : f32 to vector<8x64xf32>
    %168 = arith.addf %167, %166 : vector<8x64xf32>
    %cst_74 = arith.constant 1.000000e+00 : f32
    %169 = vector.broadcast %cst_74 : f32 to vector<8x64xf32>
    %170 = arith.divf %169, %168 : vector<8x64xf32>
    %cst_75 = arith.constant 1.06140542 : f32
    %171 = vector.broadcast %cst_75 : f32 to vector<8x64xf32>
    %172 = arith.mulf %171, %170 : vector<8x64xf32>
    %cst_76 = arith.constant -1.45315206 : f32
    %173 = vector.broadcast %cst_76 : f32 to vector<8x64xf32>
    %174 = arith.addf %172, %173 : vector<8x64xf32>
    %175 = arith.mulf %174, %170 : vector<8x64xf32>
    %cst_77 = arith.constant 1.42141378 : f32
    %176 = vector.broadcast %cst_77 : f32 to vector<8x64xf32>
    %177 = arith.addf %175, %176 : vector<8x64xf32>
    %178 = arith.mulf %177, %170 : vector<8x64xf32>
    %cst_78 = arith.constant -0.284496725 : f32
    %179 = vector.broadcast %cst_78 : f32 to vector<8x64xf32>
    %180 = arith.addf %178, %179 : vector<8x64xf32>
    %181 = arith.mulf %180, %170 : vector<8x64xf32>
    %cst_79 = arith.constant 0.254829586 : f32
    %182 = vector.broadcast %cst_79 : f32 to vector<8x64xf32>
    %183 = arith.addf %181, %182 : vector<8x64xf32>
    %184 = arith.mulf %183, %170 : vector<8x64xf32>
    %cst_80 = arith.constant 0.000000e+00 : f32
    %185 = vector.broadcast %cst_80 : f32 to vector<8x64xf32>
    %186 = arith.subf %185, %164 : vector<8x64xf32>
    %187 = arith.mulf %186, %164 : vector<8x64xf32>
    %188 = math.exp %187 : vector<8x64xf32>
    %189 = arith.mulf %184, %188 : vector<8x64xf32>
    %cst_81 = arith.constant 1.000000e+00 : f32
    %190 = vector.broadcast %cst_81 : f32 to vector<8x64xf32>
    %191 = arith.subf %190, %189 : vector<8x64xf32>
    %192 = arith.mulf %163, %191 : vector<8x64xf32>
    %cst_82 = arith.constant 1.000000e+00 : f32
    %193 = vector.broadcast %cst_82 : f32 to vector<8x64xf32>
    %194 = arith.addf %193, %192 : vector<8x64xf32>
    %195 = arith.mulf %156, %194 : vector<8x64xf32>
    %c0_83 = arith.constant 0 : index
    %c0_84 = arith.constant 0 : index
    %c0_85 = arith.constant 0 : index
    %196 = vector.load %arg16[%c0_83, %c0_84, %c0_85] : memref<1x64x32xbf16, #tpu.memory_space<vmem>>, vector<1x64x32xbf16>
    %197 = vector.shape_cast %196 : vector<1x64x32xbf16> to vector<64x32xbf16>
    %198 = arith.truncf %195 : vector<8x64xf32> to vector<8x64xbf16>
    %cst_86 = arith.constant dense<0.000000e+00> : vector<8x32xf32>
    %199 = tpu.matmul %198, %197, %cst_86 {dimension_numbers = #tpu.dot_dimension_numbers<[1], [0], [0], [1], [0, 0, 1, 1], [], []>} : vector<8x64xbf16>, vector<64x32xbf16>, vector<8x32xf32> -> vector<8x32xf32>
    %c0_87 = arith.constant 0 : index
    %c0_88 = arith.constant 0 : index
    %c0_89 = arith.constant 0 : index
    %200 = vector.load %arg17[%c0_87, %c0_88, %c0_89] : memref<1x1x32xf32, #tpu.memory_space<vmem>>, vector<1x1x32xf32>
    %201 = vector.shape_cast %200 : vector<1x1x32xf32> to vector<1x32xf32>
    %202 = vector.broadcast %201 : vector<1x32xf32> to vector<8x32xf32>
    %203 = arith.addf %199, %202 : vector<8x32xf32>
    %204 = arith.addf %120, %203 : vector<8x32xf32>
    %c0_90 = arith.constant 0 : index
    %c0_91 = arith.constant 0 : index
    %205 = vector.load %arg18[%c0_90, %c0_91] : memref<8x32xf32, #tpu.memory_space<vmem>>, vector<8x32xf32>
    tpu.vector_store %arg18[%c0_90, %c0_91], %204 {strides = array<i32>} : memref<8x32xf32, #tpu.memory_space<vmem>>, vector<8x32xf32>,
    return
  }
  func.func @transform_0(%arg0: i32) -> (i32, i32) {
    %c0_i32 = arith.constant 0 : i32
    %c0_i32_0 = arith.constant 0 : i32
    %c0_i32_1 = arith.constant 0 : i32
    return %c0_i32, %c0_i32_0 : i32, i32
  }
  func.func @transform_1(%arg0: i32) -> (i32, i32) {
    %c0_i32 = arith.constant 0 : i32
    %c0_i32_0 = arith.constant 0 : i32
    %c0_i32_1 = arith.constant 0 : i32
    return %c0_i32, %c0_i32_0 : i32, i32
  }
  func.func @transform_2(%arg0: i32) -> (i32, i32) {
    %c0_i32 = arith.constant 0 : i32
    %c0_i32_0 = arith.constant 0 : i32
    %c0_i32_1 = arith.constant 0 : i32
    return %c0_i32, %c0_i32_0 : i32, i32
  }
  func.func @transform_3(%arg0: i32) -> (i32, i32, i32) {
    %c0_i32 = arith.constant 0 : i32
    %c0_i32_0 = arith.constant 0 : i32
    %c0_i32_1 = arith.constant 0 : i32
    return %arg0, %c0_i32, %c0_i32_0 : i32, i32, i32
  }
  func.func @transform_4(%arg0: i32) -> (i32, i32, i32) {
    %c0_i32 = arith.constant 0 : i32
    %c0_i32_0 = arith.constant 0 : i32
    %c0_i32_1 = arith.constant 0 : i32
    return %arg0, %c0_i32, %c0_i32_0 : i32, i32, i32
  }
  func.func @transform_5(%arg0: i32) -> (i32, i32, i32) {
    %c0_i32 = arith.constant 0 : i32
    %c0_i32_0 = arith.constant 0 : i32
    %c0_i32_1 = arith.constant 0 : i32
    return %arg0, %c0_i32, %c0_i32_0 : i32, i32, i32
  }
  func.func @transform_6(%arg0: i32) -> (i32, i32, i32) {
    %c0_i32 = arith.constant 0 : i32
    %c0_i32_0 = arith.constant 0 : i32
    %c0_i32_1 = arith.constant 0 : i32
    return %arg0, %c0_i32, %c0_i32_0 : i32, i32, i32
  }
  func.func @transform_7(%arg0: i32) -> (i32, i32, i32) {
    %c0_i32 = arith.constant 0 : i32
    %c0_i32_0 = arith.constant 0 : i32
    %c0_i32_1 = arith.constant 0 : i32
    return %arg0, %c0_i32, %c0_i32_0 : i32, i32, i32
  }
  func.func @transform_8(%arg0: i32) -> (i32, i32, i32) {
    %c0_i32 = arith.constant 0 : i32
    %c0_i32_0 = arith.constant 0 : i32
    %c0_i32_1 = arith.constant 0 : i32
    return %arg0, %c0_i32, %c0_i32_0 : i32, i32, i32
  }
  func.func @transform_9(%arg0: i32) -> (i32, i32, i32) {
    %c0_i32 = arith.constant 0 : i32
    %c0_i32_0 = arith.constant 0 : i32
    %c0_i32_1 = arith.constant 0 : i32
    return %arg0, %c0_i32, %c0_i32_0 : i32, i32, i32
  }
  func.func @transform_10(%arg0: i32) -> (i32, i32, i32) {
    %c0_i32 = arith.constant 0 : i32
    %c0_i32_0 = arith.constant 0 : i32
    %c0_i32_1 = arith.constant 0 : i32
    return %arg0, %c0_i32, %c0_i32_0 : i32, i32, i32
  }
  func.func @transform_11(%arg0: i32) -> (i32, i32, i32) {
    %c0_i32 = arith.constant 0 : i32
    %c0_i32_0 = arith.constant 0 : i32
    %c0_i32_1 = arith.constant 0 : i32
    return %arg0, %c0_i32, %c0_i32_0 : i32, i32, i32
  }
  func.func @transform_12(%arg0: i32) -> (i32, i32, i32) {
    %c0_i32 = arith.constant 0 : i32
    %c0_i32_0 = arith.constant 0 : i32
    %c0_i32_1 = arith.constant 0 : i32
    return %arg0, %c0_i32, %c0_i32_0 : i32, i32, i32
  }
  func.func @transform_13(%arg0: i32) -> (i32, i32, i32) {
    %c0_i32 = arith.constant 0 : i32
    %c0_i32_0 = arith.constant 0 : i32
    %c0_i32_1 = arith.constant 0 : i32
    return %arg0, %c0_i32, %c0_i32_0 : i32, i32, i32
  }
  func.func @transform_14(%arg0: i32) -> (i32, i32, i32) {
    %c0_i32 = arith.constant 0 : i32
    %c0_i32_0 = arith.constant 0 : i32
    %c0_i32_1 = arith.constant 0 : i32
    return %arg0, %c0_i32, %c0_i32_0 : i32, i32, i32
  }
  func.func @transform_15(%arg0: i32) -> (i32, i32, i32) {
    %c0_i32 = arith.constant 0 : i32
    %c0_i32_0 = arith.constant 0 : i32
    %c0_i32_1 = arith.constant 0 : i32
    return %arg0, %c0_i32, %c0_i32_0 : i32, i32, i32
  }
  func.func @transform_16(%arg0: i32) -> (i32, i32, i32) {
    %c0_i32 = arith.constant 0 : i32
    %c0_i32_0 = arith.constant 0 : i32
    %c0_i32_1 = arith.constant 0 : i32
    return %arg0, %c0_i32, %c0_i32_0 : i32, i32, i32
  }
  func.func @transform_17(%arg0: i32) -> (i32, i32) {
    %c0_i32 = arith.constant 0 : i32
    %c0_i32_0 = arith.constant 0 : i32
    %c0_i32_1 = arith.constant 0 : i32
    return %c0_i32, %c0_i32_0 : i32, i32
  }
}

</mosaic_0001>

<bundles_post_ra>
// kernel: tpu_custom_call.1
= control target key start
LH: loop header
LB: loop body
LE: loop exit
PB: predicated region body
PF: predicated region fallthrough
CT: control target
= control target key end

     0   :  { %s3727_s0 = inlined_call_operand.vmem [shape: f32[8,32], index: 0, kind: input, shape index: {}]   ;;  %s3728_s1 = inlined_call_operand.vmem [shape: bf16[64,8], index: 1, kind: input, shape index: {}]   ;;  %s3729_s2 = inlined_call_operand.vmem [shape: f32[8,8], index: 2, kind: input, shape index: {}]   ;;  %s3730_s3 = inlined_call_operand.vmem [shape: f32[2,1,32], index: 3, kind: input, shape index: {}]   ;;  %s3731_s4 = inlined_call_operand.vmem [shape: f32[2,1,32], index: 4, kind: input, shape index: {}]   ;;  %s3732_s5 = inlined_call_operand.vmem [shape: bf16[2,32,128], index: 5, kind: input, shape index: {}]   ;;  %s3733_s6 = inlined_call_operand.vmem [shape: f32[2,1,128], index: 6, kind: input, shape index: {}]   ;;  %s3734_s7 = inlined_call_operand.vmem [shape: bf16[2,8,64], index: 7, kind: input, shape index: {}]   ;;  %s3735_s8 = inlined_call_operand.vmem [shape: bf16[2,64,2], index: 8, kind: input, shape index: {}]   ;;  %s3736_s9 = inlined_call_operand.vmem [shape: bf16[2,64,32], index: 9, kind: input, shape index: {}]   ;;  %s3737_s10 = inlined_call_operand.vmem [shape: f32[2,1,32], index: 10, kind: input, shape index: {}]   ;;  %s3738_s11 = inlined_call_operand.vmem [shape: f32[2,1,32], index: 11, kind: input, shape index: {}]   ;;  %s3739_s12 = inlined_call_operand.vmem [shape: f32[2,1,32], index: 12, kind: input, shape index: {}]   ;;  %s3740_s13 = inlined_call_operand.vmem [shape: bf16[2,32,64], index: 13, kind: input, shape index: {}]   ;;  %s3741_s14 = inlined_call_operand.vmem [shape: f32[2,1,64], index: 14, kind: input, shape index: {}]   ;;  %s3742_s15 = inlined_call_operand.vmem [shape: bf16[2,64,32], index: 15, kind: input, shape index: {}]   ;;  %s3743_s16 = inlined_call_operand.vmem [shape: f32[2,1,32], index: 16, kind: input, shape index: {}]   ;;  %s3744_s17 = inlined_call_operand.hbm [shape: f32[8,32], index: 17, kind: output, shape index: {}]  }
   0x1   :  { %3749 = sst [smem:[#allocation7_spill]] %s3727_s0 }
   0x2   :  { %3750 = sst [smem:[#allocation8_spill]] %s3728_s1 }
   0x3   :  { %3751 = sst [smem:[#allocation9_spill]] %s3729_s2 }
   0x4   :  { %3752 = sst [smem:[#allocation10_spill]] %s3730_s3 }
   0x5   :  { %3753 = sst [smem:[#allocation11_spill]] %s3731_s4 }
   0x6   :  { %3754 = sst [smem:[#allocation12_spill]] %s3732_s5 }
   0x7   :  { %3755 = sst [smem:[#allocation13_spill]] %s3734_s7 }
   0x8   :  { %3756 = sst [smem:[#allocation14_spill]] %s3735_s8 }
   0x9   :  { %3757 = sst [smem:[#allocation15_spill]] %s3736_s9 }
   0xa   :  { %3758 = sst [smem:[#allocation16_spill]] %s3744_s17 }
   0xb   :  { %22 = vsyncpa [#allocation3], 0  ;;  %s3128_s24 = smov 0  }
   0xc LB: > { %3759 = sst [smem:[#allocation5_spill]] %s3027_s24  ;;  %s3134_s25 = sadd.s32 4294967295, %s3027_s24   ;;  %s3027_s24 = sphi %s3128_s24, %s28_s24  }
   0xd   : > { %p2712_p0 = scmp.ge.s32.totalorder %s3027_s24, 1  ;;  %p596_p1 = scmp.lt.s32.totalorder %s3027_s24, 3 }
   0xf   : > { %p597_p2 = pnand %p2712_p0, %p596_p1 }
  0x11   : > { %600 = sbr.rel (%p597_p2) target bundleno = 3410 (0xd52), region = 88 }
  0x18   : > { %p691_p3 = scmp.lt.s32.totalorder %s3134_s25, 1  ;;  %s3762_s5 = sld [smem:[#allocation12_spill]] }
  0x19   : > { %s3763_s7 = sld [smem:[#allocation13_spill]]  ;;  %s3764_s8 = sld [smem:[#allocation14_spill]] }
  0x1a   : > { %s3140_s26 = scalar_select %p691_p3, %s3134_s25, 1 }
  0x1b   : > { %s3765_s9 = sld [smem:[#allocation15_spill]]  ;;  %p2724_p4 = scmp.ne.s32.totalorder %s3134_s25, 0 }
  0x1c   : > { %s2773_s19 = sshll.u32 %s3140_s26, 4  ;;  %s2715_s28 = sshll.u32 %s3140_s26, 2  ;;  %vm750_vm0 = vcmask (!%p2724_p4), 261120  }
  0x1d   : > { %s2774_s2 = sshll.u32 %s3140_s26, 5  ;;  %s721_s23 = scalar_lea.vmem %s3737_s10, %s3140_s26 }
  0x1e   : > { %s3158_s27 = scalar_lea.vmem %s3762_s5, %s2773_s19  ;;  %s3199_s22 = scalar_lea.vmem %s3742_s15, %s2774_s2 }
  0x1f   : > { %s708_s29 = scalar_lea.vmem %s3763_s7, %s2715_s28  ;;  %s3168_s30 = scalar_lea.vmem %s3764_s8, %s2774_s2 }
  0x20   : > { %s727_s7 = scalar_lea.vmem %s3739_s12, %s3140_s26  ;;  %s3190_s8 = scalar_lea.vmem %s3740_s13, %s2773_s19 }
  0x21   : > { %s3173_s1 = scalar_lea.vmem %s3765_s9, %s2774_s2  ;;  %s735_s9 = scalar_lea.vmem %s3741_s14, %s3140_s26 }
  0x22   : > { %3766 = sst [smem:[#allocation6_spill]] %s3173_s1  ;;  %s743_s17 = scalar_lea.vmem %s3743_s16, %s3140_s26 }
  0x23   : > { %748 = sbr.rel (%p2724_p4) target bundleno = 43 (0x2b), region = 92  ;;  %s3767_s19 = sld [smem:[#allocation7_spill]] (!%p2724_p4) }
  0x29   : > { %v749_v0 = vld [vmem:[%s3767_s19] sm:$0xff] (!%p2724_p4) }
  0x2a   : > { %751 = vst.msk [vmem:[#allocation2] sm:$0xff] %vm750_vm0, %v749_v0 }
  0x2b PF: > { %vm755_vm1 = vcmask 261120   ;;  %v859_v3 = vld [vmem:[%s708_s29] sm:$0xf]  ;;  %vm893_vm2 = vcmask 1043456   ;;  %s3768_s3 = sld [smem:[#allocation8_spill]]  ;;  %vm880_vm3 = vcmask 64512   ;;  %s3773_s20 = scalar_lea.vmem %s3733_s6, %s3140_s26  ;;  %v967_v49 = vlaneseq }
  0x2c   : > { %2894 = vmatprep.subr.msk.bf16.mxu1 %vm893_vm2, %v859_v3  ;;  %v895_v5 = vsel %vm893_vm2, %v859_v3, 0  ;;  %v2928_v12 = vld [vmem:[%s3158_s27] sm:$0xff]   ;;  %v3029_v15 = vmov 0.0   ;;  %vm3030_vm4 = vmmov 0   ;;  %v2931_v16 = vld [vmem:[%s3158_s27 + $0x8] sm:$0xff]   ;;  %s3031_s21 = smov 64   ;;  %s3776_s1 = scalar_lea.vmem %s3738_s11, %s3140_s26 }
  0x2d   : > { %2821 = vmatpush3.bf16.msra.mxu1 %v895_v5  ;;  %2812 = vmatprep.subr.bf16.mxu0 %v3029_v15  ;;  %s3769_s28 = sld [smem:[#allocation10_spill]]  ;;  %s3771_s0 = sld [smem:[#allocation11_spill]]  ;;  %v2727_v35 = vld [vmem:[%s3773_s20] ss:$0 sm:$0xff]  ;;  %v2933_v44 = vld [vmem:[%s3168_s30 + $0x8] sm:$0xff]   ;;  %v2934_v45 = vld [vmem:[%s3168_s30 + $0x10] sm:$0xff]  }
  0x2e   : > { %2816 = vmatprep.mubr.msk.bf16.mxu0 %vm3030_vm4, %v3029_v15  ;;  %2813 = vmatpush3.bf16.msra.mxu0 %v2928_v12  ;;  %v2932_v43 = vld [vmem:[%s3168_s30] sm:$0xff]   ;;  %v2935_v46 = vld [vmem:[%s3168_s30 + $0x18] sm:$0xff]   ;;  %v3032_v47 = vmov 1966171168   ;;  %v3274_v51 = vshrl.u32 %v967_v49, 7  ;;  %s3774_s27 = sld [smem:[#allocation9_spill]] }
  0x2f   : > { %2814 = vmatprep.subr.bf16.mxu0 %v3029_v15  ;;  %2830 = vmatprep.subr.bf16.mxu1 %v2932_v43  ;;  %v965_v48 = vunpack.c.l.s4 %v3032_v47  ;;  %vm1175_vm13 = vcmask 523264   ;;  %vm1408_vm14 = vcmask 1041409   ;;  %vm1410_vm15 = vcmask 1042434   ;;  %s3035_s24 = smov 96   ;;  %s3037_s29 = smov [#allocation2]  }
  0x30   : > { %vm1412_vm0 = vcmask 1043459   ;;  %s2538_s18 = sshll.u32 %s3037_s29, 4  ;;  %p2899_p5 = scmp.eq.s32.totalorder %s3134_s25, 1  ;;  %s2539_s18 = int_to_ptr.vmem [resolvable:$true] %s2538_s18 }
  0x31   : > { %v752_v1 = vld [vmem:[#allocation2] sm:$0xff]  ;;  %v2927_v6 = vld [vmem:[%s3768_s3 + $0x8] sm:$0xff]   ;;  %v2929_v13 = vld [vmem:[%s3768_s3 + $0x10] sm:$0xff]   ;;  %v966_v50 = vunpack.c.0.s8 %v965_v48  ;;  %s2991_s20 = scalar_lea.vmem %s2539_s18, 128  ;;  %p2998_p9 = scmp.lt.s32.totalorder %s2539_s18, %s2539_s18 }
  0x32   : > { %v756_v2 = vsel %vm755_vm1, %v752_v1, 0.0  ;;  %v2926_v4 = vld [vmem:[%s3768_s3] sm:$0xff]   ;;  %v2930_v14 = vld [vmem:[%s3768_s3 + $0x18] sm:$0xff]   ;;  %2815 = vmatpush3.bf16.msra.mxu0 %v2931_v16  ;;  %p2992_p6 = scmp.ne.s32.totalorder %s2539_s18, %s2991_s20  ;;  %p2999_p10 = scmp.lt.s32.totalorder %s2991_s20, %s2991_s20 }
  0x33   : > { %757 = vadd.xlane.f32.xlu0 %v756_v2  ;;  %2822 = vmatprep.mubr.msk.bf16.mxu1 %vm880_vm3, %v2926_v4  ;;  %s3770_s19 = scalar_lea.vmem %s3769_s28, %s3140_s26  ;;  %s3772_s4 = scalar_lea.vmem %s3771_s0, %s3140_s26  ;;  %v969_v53 = vsub.s32 %v966_v50, %v3274_v51  ;;  %v3278_v2 = vsub.s32 0, %v3274_v51 }
  0x34   : > { %2823 = vmatmul.mubr.msk.bf16.vlgmr.msra.gmra.mrb[0].mxu1 %vm880_vm3, %v2927_v6  ;;  %2846 = vmatprep.subr.bf16.mxu0 %v3029_v15  ;;  %v2725_v25 = vld [vmem:[%s3770_s19] ss:$0 sm:$0xff]  ;;  %p2993_p7 = pnand %p2992_p6, %p2899_p5  ;;  %p3000_p11 = por %p2999_p10, %p2998_p9 }
  0x35   : > { %2826 = vmatprep.mubr.msk.bf16.mxu1 %vm880_vm3, %v2929_v13  ;;  %v2726_v27 = vld [vmem:[%s3772_s4] ss:$0 sm:$0xff]  ;;  %2831 = vmatpush3.bf16.msra.mxu1 %v2932_v43 }
  0x36   : > { %2832 = vmatprep.subr.bf16.mxu1 %v2933_v44  ;;  %p2994_p8 = pneg %p2993_p7 }
  0x38   : > { %p3001_p12 = pnand %p3000_p11, %p2994_p8 }
  0x39   : > { %2833 = vmatpush3.bf16.msra.mxu1 %v2933_v44 }
  0x3a   : > { %2834 = vmatprep.subr.bf16.mxu1 %v2934_v45 }
  0x3c   : > { %2827 = vmatmul.mubr.msk.bf16.gmra.mrb[4].mxu1 %vm880_vm3, %v2930_v14 }
  0x3d   : > { %2835 = vmatpush3.bf16.msra.mxu1 %v2934_v45 }
  0x3e   : > { %2836 = vmatprep.subr.bf16.mxu1 %v2935_v46 }
  0x41   : > { %2837 = vmatpush3.bf16.msra.mxu1 %v2935_v46 }
  0x42   : > { %2882 = vmatprep.subr.bf16.mxu1 %v3029_v15 }
  0xc0   : > { %v758_v7 = vpop.xlane.xlu0 %757 }
  0xc1   : > { %v760_v8 = vmul.f32 0.03125, %v758_v7 }
  0xc3   : > { %v761_v9 = vsub.f32 %v752_v1, %v760_v8 }
  0xc5   : > { %v762_v10 = vmul.f32 %v761_v9, %v761_v9 }
  0xc7   : > { %v763_v11 = vsel %vm755_vm1, %v762_v10, 0.0 }
  0xc8   : > { %764 = vadd.xlane.f32.xlu0 %v763_v11 }
 0x107   : > { %v2824_v17 = vpop.f32.mrb[0].mxu1 }
 0x108   : > { %v931_v18 = vpop.f32.mrb[1].mxu1 }
 0x109   : > { %1071 = vrot.lane.b32.xlu1 %v931_v18, %s3031_s21  ;;  %v2825_v19 = vpop.f32.mrb[2].mxu1 }
 0x10a   : > { %v934_v20 = vpop.f32.mrb[3].mxu1 }
 0x10b   : > { %1073 = vrot.lane.b32.xlu0 %v934_v20, %s3031_s21 }
 0x10d   : > { %1075 = vrot.lane.b32.xlu1 %v2824_v17, %s3031_s21 }
 0x10f   : > { %v2828_v31 = vpop.f32.mrb[4].mxu1 }
 0x110   : > { %v947_v32 = vpop.f32.mrb[5].mxu1 }
 0x111   : > { %1077 = vrot.lane.b32.xlu1 %v2825_v19, %s3031_s21  ;;  %v2829_v33 = vpop.f32.mrb[6].mxu1 }
 0x112   : > { %v950_v34 = vpop.f32.mrb[7].mxu1 }
 0x115   : > { %1079 = vrot.lane.b32.xlu1 %v947_v32, %s3031_s21 }
 0x155   : > { %v765_v21 = vpop.xlane.xlu0 %764 }
 0x156   : > { %v766_v22 = vmul.f32 0.03125, %v765_v21 }
 0x158   : > { %v767_v23 = vadd.f32 1e-05, %v766_v22 }
 0x15a   : > { %2946 = vrsqrt.f32 %v767_v23 }
 0x164   : > { %v2947_v24 = vpop.eup %2946 }
 0x165   : > { %v769_v26 = vmul.f32 %v2947_v24, %v761_v9 }
 0x167   : > { %v776_v28 = vmul.f32 %v2725_v25, %v769_v26 }
 0x169   : > { %v783_v29 = vadd.f32 %v2726_v27, %v776_v28 }
 0x16b   : > { %v788_v30 = vpack.c.bf16 %v783_v29, %v783_v29 }
 0x16d   : > { %2817 = vmatmul.mubr.msk.bf16.vlgmr.msra.gmra.mrb[0].mxu0 %vm755_vm1, %v788_v30 }
 0x16e   : > { %2848 = vmatprep.mubr.msk.bf16.mxu0 %vm3030_vm4, %v3029_v15 }
 0x17b   : > { %v1072_v52 = vpop.permute.xlu1 %1071 }
 0x17d   : > { %v1074_v19 = vpop.permute.xlu0 %1073 }
 0x17f   : > { %v1076_v55 = vpop.permute.xlu1 %1075 }
 0x183   : > { %v1078_v59 = vpop.permute.xlu1 %1077 }
 0x187   : > { %v1080_v63 = vpop.permute.xlu1 %1079 }
 0x240   : > { %v845_v36 = vpop.f32.mrb[0].mxu0 }
 0x241   : > { %v846_v37 = vadd.f32 %v2727_v35, %v845_v36  ;;  %v2818_v38 = vpop.f32.mrb[1].mxu0 }
 0x242   : > { %v848_v39 = vpop.f32.mrb[2].mxu0 }
 0x243   : > { %1052 = vrot.lane.b32.xlu1 %v846_v37, %s3031_s21  ;;  %v2819_v40 = vpop.f32.mrb[3].mxu0  ;;  %v3260_v41 = vpack.c.bf16 %v846_v37, %v846_v37  ;;  %v970_v54 = vrot.slane %v846_v37, %v969_v53  ;;  %v963_v56 = vcombine.high %v846_v37, %v846_v37 }
 0x245   : > { %v1758_v42 = vsel %vm893_vm2, %v3260_v41, 0  ;;  %v978_v57 = vcombine.high %v970_v54, %v970_v54  ;;  %v977_v58 = vrot.slane %v963_v56, %v969_v53  ;;  %v986_v60 = vrot.slane %v970_v54, %v969_v53 }
 0x246   : > { %2847 = vmatpush3.bf16.msra.mxu0 %v1758_v42 }
 0x247   : > { %1081 = vrot.lane.b32.xlu1 %v950_v34, %s3031_s21  ;;  %2852 = vmatprep.subr.bf16.mxu0 %v3029_v15  ;;  %v1000_v61 = vrot.slane %v978_v57, %v969_v53  ;;  %v979_v62 = vcombine.high %v977_v58, %v977_v58  ;;  %v1008_v0 = vcombine.high %v986_v60, %v986_v60 }
 0x248   : > { %v993_v3 = vrot.slane %v977_v58, %v969_v53  ;;  %v1015_v7 = vrot.slane %v986_v60, %v3278_v2  ;;  %v3302_v60 = vsub.s32 2, %v3274_v51 }
 0x249   : > { %v1010_v1 = vcombine.high %v1000_v61, %v1000_v61  ;;  %v1007_v4 = vrot.slane %v979_v62, %v969_v53  ;;  %v1023_v5 = vrot.slane %v1008_v0, %v3278_v2  ;;  %v1019_v11 = vrot.slane %v1000_v61, %v3278_v2 }
 0x24a   : > { %v1009_v9 = vcombine.high %v993_v3, %v993_v3  ;;  %v1031_v10 = vrot.slane %v993_v3, %v3278_v2  ;;  %v3310_v3 = vsub.s32 3, %v3274_v51 }
 0x24b   : > { %1083 = vrot.lane.b32.xlu1 %v2828_v31, %s3031_s21  ;;  %v1027_v6 = vrot.slane %v1010_v1, %v3278_v2  ;;  %v1035_v12 = vrot.slane %v1007_v4, %v3278_v2  ;;  %v1011_v23 = vcombine.high %v1007_v4, %v1007_v4  ;;  %v3313_v4 = vsub.s32 4, %v3274_v51 }
 0x24c   : > { %v1039_v25 = vrot.slane %v1009_v9, %v3278_v2 }
 0x24d   : > { %v1043_v40 = vrot.slane %v1011_v23, %v3278_v2 }
 0x24f   : > { %1085 = vrot.lane.b32.xlu1 %v2829_v33, %s3031_s21 }
 0x2b5   : > { %v1053_v8 = vpop.permute.xlu1 %1052 }
 0x2b6   : > { %v1057_v13 = vadd.f32 %v1053_v8, %v1023_v5  ;;  %v1058_v14 = vadd.f32 %v1053_v8, %v1027_v6  ;;  %v1055_v16 = vadd.f32 %v1053_v8, %v1015_v7  ;;  %v1056_v17 = vadd.f32 %v1053_v8, %v1019_v11 }
 0x2b7   : > { %v1059_v18 = vadd.f32 %v1053_v8, %v1031_v10  ;;  %v1060_v20 = vadd.f32 %v1053_v8, %v1035_v12  ;;  %v1061_v34 = vadd.f32 %v1053_v8, %v1039_v25  ;;  %v1062_v47 = vadd.f32 %v1053_v8, %v1043_v40 }
 0x2b8   : > { %v1097_v21 = vadd.f32 %v1076_v55, %v1057_v13  ;;  %v1098_v22 = vadd.f32 %v1078_v59, %v1058_v14  ;;  %v1095_v26 = vadd.f32 %v1072_v52, %v1055_v16  ;;  %v1096_v27 = vadd.f32 %v1074_v19, %v1056_v17  ;;  %v3293_v55 = vld [vmem:[%s3774_s27] sm:$0xff] }
 0x2b9   : > { %v1082_v24 = vpop.permute.xlu1 %1081  ;;  %v1099_v28 = vadd.f32 %v1080_v63, %v1059_v18  ;;  %v1273_v58 = vrot.slane %v3293_v55, %v3278_v2  ;;  %v3299_v59 = vsub.s32 1, %v3274_v51  ;;  %v1287_v1 = vrot.slane %v3293_v55, %v3302_v60 }
 0x2ba   : > { %v1100_v29 = vadd.f32 %v1082_v24, %v1060_v20  ;;  %vm1105_vm5 = vcmp.gt.f32.partialorder %v1097_v21, 0.0  ;;  %vm1106_vm6 = vcmp.gt.f32.partialorder %v1098_v22, 0.0  ;;  %v1113_v30 = vmul.f32 0.2, %v1097_v21 }
 0x2bb   : > { %v1114_v31 = vmul.f32 0.2, %v1098_v22  ;;  %vm1103_vm7 = vcmp.gt.f32.partialorder %v1095_v26, 0.0  ;;  %vm1104_vm8 = vcmp.gt.f32.partialorder %v1096_v27, 0.0  ;;  %v1111_v32 = vmul.f32 0.2, %v1095_v26 }
 0x2bc   : > { %v1116_v33 = vmul.f32 0.2, %v1100_v29  ;;  %v1121_v35 = vsel %vm1105_vm5, %v1097_v21, %v1113_v30  ;;  %v1112_v36 = vmul.f32 0.2, %v1096_v27  ;;  %vm1108_vm9 = vcmp.gt.f32.partialorder %v1100_v29, 0.0 }
 0x2bd   : > { %v1084_v37 = vpop.permute.xlu1 %1083  ;;  %v1122_v38 = vsel %vm1106_vm6, %v1098_v22, %v1114_v31  ;;  %v1119_v39 = vsel %vm1103_vm7, %v1095_v26, %v1111_v32  ;;  %v1115_v45 = vmul.f32 0.2, %v1099_v28  ;;  %vm1107_vm10 = vcmp.gt.f32.partialorder %v1099_v28, 0.0 }
 0x2be   : > { %v1101_v42 = vadd.f32 %v1084_v37, %v1061_v34  ;;  %v1136_v43 = vpack.c.bf16 %v1122_v38, %v1121_v35  ;;  %v1120_v44 = vsel %vm1104_vm8, %v1096_v27, %v1112_v36  ;;  %v1124_v48 = vsel %vm1108_vm9, %v1100_v29, %v1116_v33 }
 0x2bf   : > { %v1135_v46 = vpack.c.bf16 %v1120_v44, %v1119_v39  ;;  %v1123_v54 = vsel %vm1107_vm10, %v1099_v28, %v1115_v45  ;;  %v1280_v0 = vrot.slane %v3293_v55, %v3299_v59  ;;  %v1294_v5 = vrot.slane %v3293_v55, %v3310_v3 }
 0x2c0   : > { %1145 = vrot.lane.b32.xlu1 %v1136_v43, %s3031_s21  ;;  %v1117_v52 = vmul.f32 0.2, %v1101_v42  ;;  %vm1109_vm11 = vcmp.gt.f32.partialorder %v1101_v42, 0.0  ;;  %v1137_v56 = vpack.c.bf16 %v1124_v48, %v1123_v54  ;;  %v1301_v6 = vrot.slane %v3293_v55, %v3313_v4 }
 0x2c1   : > { %1143 = vrot.lane.b32.xlu0 %v1135_v46, %s3031_s21  ;;  %v1086_v50 = vpop.permute.xlu1 %1085  ;;  %v3320_v7 = vsub.s32 5, %v3274_v51  ;;  %v3323_v8 = vsub.s32 6, %v3274_v51  ;;  %v3330_v11 = vsub.s32 7, %v3274_v51  ;;  %v3033_v18 = vmov 0  }
 0x2c2   : > { %v1102_v53 = vadd.f32 %v1086_v50, %v1062_v47  ;;  %v1125_v61 = vsel %vm1109_vm11, %v1101_v42, %v1117_v52  ;;  %2918 = vset.pattern.permute.xlu1 %v3033_v18  ;;  %2919 = vset.pattern.permute.xlu0 %v3033_v18  ;;  %v3034_v44 = vmov 1   ;;  %v1375_v45 = vand.u32 127, %v967_v49 }
 0x2c3   : > { %v1308_v9 = vrot.slane %v3293_v55, %v3320_v7  ;;  %v1315_v10 = vrot.slane %v3293_v55, %v3323_v8  ;;  %v1322_v12 = vrot.slane %v3293_v55, %v3330_v11  ;;  %vm1414_vm5 = vcmask 1044484  }
 0x2c4   : > { %vm1110_vm12 = vcmp.gt.f32.partialorder %v1102_v53, 0.0  ;;  %v1118_v57 = vmul.f32 0.2, %v1102_v53  ;;  %v3369_v47 = vsub.s32 %v1375_v45, %v3274_v51  ;;  %vm1416_vm6 = vcmask 1045509  }
 0x2c5   : > { %1147 = vrot.lane.b32.xlu0 %v1137_v56, %s3031_s21  ;;  %vm1418_vm7 = vcmask 1046534   ;;  %vm1420_vm8 = vcmask 1047559  }
 0x2c6   : > { %v1126_v62 = vsel %vm1110_vm12, %v1102_v53, %v1118_v57 }
 0x2c7   : > { %v1138_v63 = vpack.c.bf16 %v1126_v62, %v1125_v61 }
 0x2c9   : > { %1149 = vrot.lane.b32.xlu1 %v1138_v63, %s3031_s21  ;;  %1275 = vbcast.lane.b32.xlu0 %v1273_v58, 256  ;;  %s3775_s21 = sld [smem:[#allocation6_spill]] }
 0x2cd   : > { %1282 = vbcast.lane.b32.xlu1 %v1280_v0, 256  ;;  %1289 = vbcast.lane.b32.xlu0 %v1287_v1, 256 }
 0x2d1   : > { %1296 = vbcast.lane.b32.xlu1 %v1294_v5, 256  ;;  %1303 = vbcast.lane.b32.xlu0 %v1301_v6, 256 }
 0x2d5   : > { %1310 = vbcast.lane.b32.xlu1 %v1308_v9, 256  ;;  %1317 = vbcast.lane.b32.xlu0 %v1315_v10, 256 }
 0x2d9   : > { %1324 = vbcast.lane.b32.xlu1 %v1322_v12, 256 }
 0x332   : > { %v1146_v13 = vpop.permute.xlu1 %1145 }
 0x333   : > { %v1144_v14 = vpop.permute.xlu0 %1143 }
 0x334   : > { %2838 = vmatprep.mubr.msk.bf16.mxu1 %vm1175_vm13, %v1144_v14 }
 0x335   : > { %2839 = vmatmul.mubr.msk.bf16.vlgmr.msra.gmra.mrb[8].mxu1 %vm1175_vm13, %v1146_v13 }
 0x337   : > { %v1148_v16 = vpop.permute.xlu0 %1147 }
 0x338   : > { %2842 = vmatprep.mubr.msk.bf16.mxu1 %vm1175_vm13, %v1148_v16 }
 0x33b   : > { %v1150_v17 = vpop.permute.xlu1 %1149  ;;  %v1276_v19 = vpop.permute.xlu0 %1275 }
 0x33d   : > { %2843 = vmatmul.mubr.msk.bf16.gmra.mrb[12].mxu1 %vm1175_vm13, %v1150_v17 }
 0x33e   : > { %2890 = vmatprep.mubr.msk.bf16.mxu1 %vm3030_vm4, %v3029_v15 }
 0x33f   : > { %v1283_v20 = vpop.permute.xlu1 %1282  ;;  %v1290_v21 = vpop.permute.xlu0 %1289 }
 0x343   : > { %v1297_v25 = vpop.permute.xlu1 %1296  ;;  %v1304_v30 = vpop.permute.xlu0 %1303 }
 0x347   : > { %v1311_v32 = vpop.permute.xlu1 %1310  ;;  %v1318_v37 = vpop.permute.xlu0 %1317 }
 0x34b   : > { %v1325_v40 = vpop.permute.xlu1 %1324 }
 0x408   : > { %v2840_v22 = vpop.f32.mrb[8].mxu1 }
 0x409   : > { %v3342_v23 = vadd.f32 %v2840_v22, %v1290_v21  ;;  %v1222_v24 = vpop.f32.mrb[9].mxu1 }
 0x40a   : > { %v3344_v26 = vadd.f32 %v1276_v19, %v1222_v24  ;;  %v2841_v27 = vpop.f32.mrb[10].mxu1 }
 0x40b   : > { %v1225_v28 = vpop.f32.mrb[11].mxu1  ;;  %1357 = vperm.xlu1 %2918, %v3342_v23   ;;  %v3350_v31 = vadd.f32 %v2841_v27, %v1297_v25 }
 0x40c   : > { %v3347_v29 = vadd.f32 %v1283_v20, %v1225_v28  ;;  %1351 = vperm.xlu0 %2919, %v3344_v26  }
 0x40f   : > { %1354 = vperm.xlu1 %2918, %v3347_v29  }
 0x410   : > { %1360 = vperm.xlu0 %2919, %v3350_v31   ;;  %v2844_v33 = vpop.f32.mrb[12].mxu1 }
 0x411   : > { %v1238_v34 = vpop.f32.mrb[13].mxu1  ;;  %v3359_v42 = vadd.f32 %v2844_v33, %v1318_v37 }
 0x412   : > { %v3354_v35 = vadd.f32 %v1304_v30, %v1238_v34  ;;  %v2845_v36 = vpop.f32.mrb[14].mxu1 }
 0x413   : > { %v1241_v38 = vpop.f32.mrb[15].mxu1  ;;  %v3362_v43 = vadd.f32 %v2845_v36, %v1325_v40 }
 0x414   : > { %v3356_v39 = vadd.f32 %v1311_v32, %v1241_v38  ;;  %1363 = vperm.xlu1 %2918, %v3354_v35  }
 0x416   : > { %1366 = vperm.xlu0 %2919, %v3356_v39  }
 0x418   : > { %1369 = vperm.xlu1 %2918, %v3359_v42  }
 0x41a   : > { %1372 = vperm.xlu0 %2919, %v3362_v43  }
 0x41c   : > { %2921 = vset.pattern.permute.xlu1 %v3034_v44 }
 0x48a   : > { %v1358_v46 = vpop.permute.xlu1 %1357 }
 0x48b   : > { %v1352_v48 = vpop.permute.xlu0 %1351  ;;  %v1387_v56 = vrot.slane %v1358_v46, %v3369_v47 }
 0x48c   : > { %v1379_v52 = vrot.slane %v1352_v48, %v3369_v47 }
 0x48e   : > { %v1355_v50 = vpop.permute.xlu1 %1354 }
 0x48f   : > { %v1383_v53 = vrot.slane %v1355_v50, %v3369_v47  ;;  %v1361_v54 = vpop.permute.xlu0 %1360 }
 0x490   : > { %v1391_v58 = vrot.slane %v1361_v54, %v3369_v47 }
 0x491   : > { %v1409_v57 = vsel %vm1408_vm14, %v1383_v53, %v1379_v52 }
 0x492   : > { %v1411_v49 = vsel %vm1410_vm15, %v1387_v56, %v1409_v57 }
 0x493   : > { %v1364_v51 = vpop.permute.xlu1 %1363  ;;  %v1413_v62 = vsel %vm1412_vm0, %v1391_v58, %v1411_v49 }
 0x494   : > { %v1395_v61 = vrot.slane %v1364_v51, %v3369_v47 }
 0x495   : > { %v1367_v63 = vpop.permute.xlu0 %1366 }
 0x496   : > { %v1415_v0 = vsel %vm1414_vm5, %v1395_v61, %v1413_v62  ;;  %v1399_v1 = vrot.slane %v1367_v63, %v3369_v47 }
 0x497   : > { %v1370_v5 = vpop.permute.xlu1 %1369 }
 0x498   : > { %v1417_v6 = vsel %vm1416_vm6, %v1399_v1, %v1415_v0  ;;  %v1403_v9 = vrot.slane %v1370_v5, %v3369_v47  ;;  %v1254_v1 = vsel %vm880_vm3, %v3293_v55, -inf }
 0x499   : > { %v1373_v10 = vpop.permute.xlu0 %1372 }
 0x49a   : > { %v1407_v12 = vrot.slane %v1373_v10, %v3369_v47  ;;  %v1419_v13 = vsel %vm1418_vm7, %v1403_v9, %v1417_v6 }
 0x49c   : > { %v1421_v14 = vsel %vm1420_vm8, %v1407_v12, %v1419_v13 }
 0x49d   : > { %v1423_v16 = vsel %vm880_vm3, %v1421_v14, -inf }
 0x49e   : > { %1424 = vmax.xlane.f32.xlu1 %v1423_v16 }
 0x4af   : > { %1867 = vperm.xlu1 %2921, %v3347_v29  }
 0x4b3   : > { %1879 = vperm.xlu1 %2921, %v3356_v39  }
 0x4b7   : > { %1885 = vperm.xlu1 %2921, %v3362_v43  }
 0x4bb   : > { %2923 = vset.pattern.permute.xlu1 %v3033_v18 }
 0x4db   : > { %1255 = vmax.xlane.f32.xlu1 %v1254_v1 }
 0x52b   : > { %v1425_v17 = vpop.xlane.xlu1 %1424 }
 0x52c   : > { %v1430_v19 = vrot.slane %v1425_v17, %v3278_v2  ;;  %v1434_v20 = vrot.slane %v1425_v17, %v3299_v59  ;;  %v1438_v21 = vrot.slane %v1425_v17, %v3302_v60  ;;  %v1442_v27 = vrot.slane %v1425_v17, %v3310_v3 }
 0x52d   : > { %v1446_v32 = vrot.slane %v1425_v17, %v3313_v4  ;;  %v1450_v36 = vrot.slane %v1425_v17, %v3320_v7  ;;  %v1454_v45 = vrot.slane %v1425_v17, %v3323_v8  ;;  %v1458_v52 = vrot.slane %v1425_v17, %v3330_v11 }
 0x52e   : > { %v1467_v22 = vsub.f32 %v3344_v26, %v1430_v19  ;;  %v1468_v24 = vsub.f32 %v3347_v29, %v1434_v20  ;;  %v1469_v28 = vsub.f32 %v3342_v23, %v1438_v21  ;;  %v1470_v33 = vsub.f32 %v3350_v31, %v1442_v27 }
 0x52f   : > { %v1471_v37 = vsub.f32 %v3354_v35, %v1446_v32  ;;  %v1472_v46 = vsub.f32 %v3356_v39, %v1450_v36  ;;  %v1473_v53 = vsub.f32 %v3359_v42, %v1454_v45  ;;  %v1474_v57 = vsub.f32 %v3362_v43, %v1458_v52 }
 0x530   : > { %v1475_v25 = vmul.f32 1.442695, %v1467_v22  ;;  %v1477_v30 = vmul.f32 1.442695, %v1468_v24  ;;  %v1479_v34 = vmul.f32 1.442695, %v1469_v28 }
 0x531   : > { %v1481_v38 = vmul.f32 1.442695, %v1470_v33  ;;  %v1483_v48 = vmul.f32 1.442695, %v1471_v37  ;;  %v1485_v54 = vmul.f32 1.442695, %v1472_v46 }
 0x532   : > { %2948 = vpow2.f32 %v1475_v25  ;;  %v1487_v58 = vmul.f32 1.442695, %v1473_v53  ;;  %v1489_v51 = vmul.f32 1.442695, %v1474_v57 }
 0x533   : > { %2950 = vpow2.f32 %v1477_v30 }
 0x534   : > { %2952 = vpow2.f32 %v1479_v34 }
 0x535   : > { %2954 = vpow2.f32 %v1481_v38  ;;  %v1868_v38 = vpop.permute.xlu1 %1867 }
 0x536   : > { %2956 = vpow2.f32 %v1483_v48 }
 0x537   : > { %2958 = vpow2.f32 %v1485_v54  ;;  %v1894_v54 = vrot.slane %v1868_v38, %v3369_v47 }
 0x538   : > { %2960 = vpow2.f32 %v1487_v58 }
 0x539   : > { %2962 = vpow2.f32 %v1489_v51  ;;  %v1880_v52 = vpop.permute.xlu1 %1879 }
 0x53c   : > { %v3402_v40 = vpop.eup %2948 }
 0x53d   : > { %1500 = vperm.xlu0 %2919, %v3402_v40   ;;  %v3407_v50 = vpop.eup %2950 }
 0x53e   : > { %v3412_v56 = vpop.eup %2952 }
 0x53f   : > { %v3416_v49 = vpop.eup %2954 }
 0x540   : > { %v3419_v61 = vpop.eup %2956 }
 0x541   : > { %1503 = vperm.xlu0 %2919, %v3407_v50   ;;  %v3422_v62 = vpop.eup %2958 }
 0x542   : > { %v3425_v63 = vpop.eup %2960 }
 0x543   : > { %v3428_v0 = vpop.eup %2962 }
 0x545   : > { %1506 = vperm.xlu0 %2919, %v3412_v56  }
 0x549   : > { %1509 = vperm.xlu0 %2919, %v3416_v49  }
 0x54d   : > { %1512 = vperm.xlu0 %2919, %v3419_v61  }
 0x551   : > { %1515 = vperm.xlu0 %2919, %v3422_v62  }
 0x555   : > { %1518 = vperm.xlu0 %2919, %v3425_v63  }
 0x559   : > { %1521 = vperm.xlu0 %2919, %v3428_v0  }
 0x55d   : > { %2920 = vset.pattern.permute.xlu0 %v3034_v44 }
 0x55e   : > { %1864 = vperm.xlu0 %2920, %v3344_v26  }
 0x562   : > { %1870 = vperm.xlu0 %2920, %v3342_v23  }
 0x566   : > { %1873 = vperm.xlu0 %2920, %v3350_v31  }
 0x56a   : > { %1876 = vperm.xlu0 %2920, %v3354_v35  }
 0x56e   : > { %1882 = vperm.xlu0 %2920, %v3359_v42  }
 0x572   : > { %2922 = vset.pattern.permute.xlu0 %v3033_v18 }
 0x5bc   : > { %v1501_v5 = vpop.permute.xlu0 %1500 }
 0x5bd   : > { %v1526_v17 = vrot.slane %v1501_v5, %v3369_v47 }
 0x5c0   : > { %v1504_v6 = vpop.permute.xlu0 %1503 }
 0x5c1   : > { %v1530_v14 = vrot.slane %v1504_v6, %v3369_v47 }
 0x5c3   : > { %v1555_v21 = vsel %vm1408_vm14, %v1530_v14, %v1526_v17 }
 0x5c4   : > { %v1507_v9 = vpop.permute.xlu0 %1506 }
 0x5c5   : > { %v1534_v16 = vrot.slane %v1507_v9, %v3369_v47  ;;  %v1886_v9 = vpop.permute.xlu1 %1885 }
 0x5c7   : > { %v1556_v22 = vsel %vm1410_vm15, %v1534_v16, %v1555_v21  ;;  %v1918_v16 = vrot.slane %v1886_v9, %v3369_v47 }
 0x5c8   : > { %v1510_v10 = vpop.permute.xlu0 %1509 }
 0x5c9   : > { %v1538_v55 = vrot.slane %v1510_v10, %v3369_v47 }
 0x5cb   : > { %v1557_v25 = vsel %vm1412_vm0, %v1538_v55, %v1556_v22 }
 0x5cc   : > { %v1513_v12 = vpop.permute.xlu0 %1512 }
 0x5cd   : > { %v1542_v19 = vrot.slane %v1513_v12, %v3369_v47  ;;  %v1910_v12 = vrot.slane %v1880_v52, %v3369_v47 }
 0x5cf   : > { %v1558_v27 = vsel %vm1414_vm5, %v1542_v19, %v1557_v25 }
 0x5d0   : > { %v1516_v13 = vpop.permute.xlu0 %1515 }
 0x5d1   : > { %v1546_v18 = vrot.slane %v1516_v13, %v3369_v47 }
 0x5d3   : > { %v1559_v30 = vsel %vm1416_vm6, %v1546_v18, %v1558_v27  ;;  %v1256_v18 = vpop.xlane.xlu1 %1255 }
 0x5d4   : > { %v1519_v20 = vpop.permute.xlu0 %1518  ;;  %vm1257_vm9 = vcmp.gt.f32.partialorder %v1256_v18, -1.0 }
 0x5d5   : > { %v1550_v24 = vrot.slane %v1519_v20, %v3369_v47  ;;  %v2747_v22 = vsel %vm1257_vm9, 1.0, %v3029_v15 }
 0x5d6   : > { %v3474_v25 = vrot.slane %v2747_v22, %v3299_v59  ;;  %v3477_v27 = vrot.slane %v2747_v22, %v3278_v2 }
 0x5d7   : > { %v1560_v33 = vsel %vm1418_vm7, %v1550_v24, %v1559_v30 }
 0x5d8   : > { %v1522_v28 = vpop.permute.xlu0 %1521 }
 0x5d9   : > { %v1554_v32 = vrot.slane %v1522_v28, %v3369_v47  ;;  %v3480_v28 = vrot.slane %v2747_v22, %v3302_v60 }
 0x5db   : > { %v1561_v34 = vsel %vm1420_vm8, %v1554_v32, %v1560_v33 }
 0x5dc   : > { %v1563_v36 = vsel %vm880_vm3, %v1561_v34, 0.0 }
 0x5dd   : > { %1564 = vadd.xlane.f32.xlu0 %v1563_v36  ;;  %v1865_v37 = vpop.permute.xlu0 %1864 }
 0x5de   : > { %v1890_v46 = vrot.slane %v1865_v37, %v3369_v47 }
 0x5e0   : > { %v1919_v58 = vsel %vm1408_vm14, %v1894_v54, %v1890_v46 }
 0x5e1   : > { %v1871_v45 = vpop.permute.xlu0 %1870 }
 0x5e2   : > { %v1898_v53 = vrot.slane %v1871_v45, %v3369_v47  ;;  %v3490_v45 = vrot.slane %v2747_v22, %v3310_v3 }
 0x5e4   : > { %v1920_v1 = vsel %vm1410_vm15, %v1898_v53, %v1919_v58 }
 0x5e5   : > { %v1874_v48 = vpop.permute.xlu0 %1873 }
 0x5e6   : > { %v1902_v57 = vrot.slane %v1874_v48, %v3369_v47 }
 0x5e8   : > { %v1921_v6 = vsel %vm1412_vm0, %v1902_v57, %v1920_v1 }
 0x5e9   : > { %v1877_v51 = vpop.permute.xlu0 %1876 }
 0x5ea   : > { %v1906_v5 = vrot.slane %v1877_v51, %v3369_v47 }
 0x5ec   : > { %v1922_v10 = vsel %vm1414_vm5, %v1906_v5, %v1921_v6 }
 0x5ed   : > { %v1883_v13 = vpop.permute.xlu0 %1882  ;;  %v1923_v17 = vsel %vm1416_vm6, %v1910_v12, %v1922_v10  ;;  %v3506_v12 = vrot.slane %v2747_v22, %v3320_v7 }
 0x5ee   : > { %v1914_v14 = vrot.slane %v1883_v13, %v3369_v47 }
 0x5f0   : > { %v1924_v55 = vsel %vm1418_vm7, %v1914_v14, %v1923_v17 }
 0x5f1   : > { %v1925_v19 = vsel %vm1420_vm8, %v1918_v16, %v1924_v55 }
 0x5f2   : > { %v1927_v20 = vsel %vm880_vm3, %v1925_v19, -inf }
 0x5f3   : > { %1928 = vmax.xlane.f32.xlu0 %v1927_v20 }
 0x66a   : > { %v1565_v21 = vpop.xlane.xlu0 %1564 }
 0x66b   : > { %2964 = vrcp.f32 %v1565_v21 }
 0x675   : > { %v2965_v24 = vpop.eup %2964 }
 0x676   : > { %v1575_v30 = vrot.slane %v2965_v24, %v3299_v59  ;;  %v1571_v32 = vrot.slane %v2965_v24, %v3278_v2  ;;  %v1579_v33 = vrot.slane %v2965_v24, %v3302_v60  ;;  %v1583_v34 = vrot.slane %v2965_v24, %v3310_v3 }
 0x677   : > { %v1587_v46 = vrot.slane %v2965_v24, %v3313_v4 }
 0x678   : > { %v1609_v36 = vmul.f32 %v3407_v50, %v1575_v30  ;;  %v1608_v37 = vmul.f32 %v3402_v40, %v1571_v32  ;;  %v1610_v38 = vmul.f32 %v3412_v56, %v1579_v33  ;;  %v1611_v54 = vmul.f32 %v3416_v49, %v1583_v34 }
 0x679   : > { %v1612_v50 = vmul.f32 %v3419_v61, %v1587_v46  ;;  %v3499_v40 = vrot.slane %v2747_v22, %v3313_v4  ;;  %v1591_v56 = vrot.slane %v2965_v24, %v3320_v7  ;;  %v1595_v61 = vrot.slane %v2965_v24, %v3323_v8 }
 0x67a   : > { %v1658_v48 = vmul.f32 %v3474_v25, %v1609_v36  ;;  %v1657_v52 = vmul.f32 %v3477_v27, %v1608_v37  ;;  %v1659_v53 = vmul.f32 %v3480_v28, %v1610_v38  ;;  %v1660_v6 = vmul.f32 %v3490_v45, %v1611_v54 }
 0x67b   : > { %v1661_v16 = vmul.f32 %v3499_v40, %v1612_v50  ;;  %v1613_v17 = vmul.f32 %v3422_v62, %v1591_v56  ;;  %v1614_v18 = vmul.f32 %v3425_v63, %v1595_v61  ;;  %v3517_v30 = vrot.slane %v2747_v22, %v3323_v8 }
 0x67c   : > { %v1666_v57 = vpack.c.bf16 %v1658_v48, %v1658_v48  ;;  %v1665_v58 = vpack.c.bf16 %v1657_v52, %v1657_v52  ;;  %v1667_v5 = vpack.c.bf16 %v1659_v53, %v1659_v53  ;;  %v1668_v14 = vpack.c.bf16 %v1660_v6, %v1660_v6 }
 0x67d   : > { %v1599_v32 = vrot.slane %v2965_v24, %v3330_v11  ;;  %v1669_v34 = vpack.c.bf16 %v1661_v16, %v1661_v16  ;;  %v1662_v36 = vmul.f32 %v3506_v12, %v1613_v17  ;;  %v1663_v63 = vmul.f32 %v3517_v30, %v1614_v18 }
 0x67e   : > { %v1683_v51 = vunpack.c.l.b16 %v1666_v57  ;;  %v1682_v1 = vunpack.c.l.b16 %v1665_v58  ;;  %v1684_v13 = vunpack.c.l.b16 %v1667_v5  ;;  %v1685_v62 = vunpack.c.l.b16 %v1668_v14 }
 0x67f   : > { %v1615_v38 = vmul.f32 %v3428_v0, %v1599_v32  ;;  %v3527_v46 = vrot.slane %v2747_v22, %v3330_v11  ;;  %v1686_v52 = vunpack.c.l.b16 %v1669_v34  ;;  %v1670_v53 = vpack.c.bf16 %v1662_v36, %v1662_v36 }
 0x680   : > { %v1929_v9 = vpop.xlane.xlu0 %1928  ;;  %1694 = vperm.xlu1 %2923, %v1683_v51   ;;  %1691 = vperm.xlu0 %2922, %v1682_v1   ;;  %v1671_v57 = vpack.c.bf16 %v1663_v63, %v1663_v63 }
 0x681   : > { %v1934_v10 = vrot.slane %v1929_v9, %v3278_v2  ;;  %v1946_v49 = vrot.slane %v1929_v9, %v3310_v3  ;;  %v1954_v55 = vrot.slane %v1929_v9, %v3320_v7  ;;  %v1938_v33 = vrot.slane %v1929_v9, %v3299_v59 }
 0x682   : > { %v1942_v24 = vrot.slane %v1929_v9, %v3302_v60  ;;  %v1664_v58 = vmul.f32 %v3527_v46, %v1615_v38  ;;  %v1950_v50 = vrot.slane %v1929_v9, %v3313_v4  ;;  %v1687_v56 = vunpack.c.l.b16 %v1670_v53 }
 0x683   : > { %v1971_v19 = vsub.f32 %v3344_v26, %v1934_v10  ;;  %v1974_v20 = vsub.f32 %v3350_v31, %v1946_v49  ;;  %v1962_v26 = vrot.slane %v1929_v9, %v3330_v11  ;;  %v1976_v31 = vsub.f32 %v3356_v39, %v1954_v55 }
 0x684   : > { %1697 = vperm.xlu1 %2923, %v1684_v13   ;;  %2924 = vset.pattern.permute.xlu0 %v3034_v44  ;;  %v1972_v48 = vsub.f32 %v3347_v29, %v1938_v33  ;;  %v1973_v0 = vsub.f32 %v3342_v23, %v1942_v24  ;;  %v1688_v1 = vunpack.c.l.b16 %v1671_v57  ;;  %v1672_v5 = vpack.c.bf16 %v1664_v58, %v1664_v58 }
 0x685   : > { %v1979_v21 = vmul.f32 1.442695, %v1971_v19  ;;  %v1985_v37 = vmul.f32 1.442695, %v1974_v20  ;;  %v1978_v54 = vsub.f32 %v3362_v43, %v1962_v26  ;;  %v1989_v39 = vmul.f32 1.442695, %v1976_v31 }
 0x686   : > { %v1981_v22 = vmul.f32 1.442695, %v1972_v48  ;;  %v1958_v43 = vrot.slane %v1929_v9, %v3323_v8  ;;  %v1975_v6 = vsub.f32 %v3354_v35, %v1950_v50  ;;  %v1983_v10 = vmul.f32 1.442695, %v1973_v0 }
 0x687   : > { %2966 = vpow2.f32 %v1979_v21  ;;  %v1993_v51 = vmul.f32 1.442695, %v1978_v54  ;;  %v1689_v13 = vunpack.c.l.b16 %v1672_v5 }
 0x688   : > { %1700 = vperm.xlu1 %2923, %v1685_v62   ;;  %2968 = vpow2.f32 %v1985_v37  ;;  %v1977_v49 = vsub.f32 %v3359_v42, %v1958_v43  ;;  %v1987_v61 = vmul.f32 1.442695, %v1975_v6 }
 0x689   : > { %2970 = vpow2.f32 %v1989_v39 }
 0x68a   : > { %2972 = vpow2.f32 %v1981_v22  ;;  %v1991_v35 = vmul.f32 1.442695, %v1977_v49 }
 0x68b   : > { %2974 = vpow2.f32 %v1993_v51 }
 0x68c   : > { %1703 = vperm.xlu1 %2923, %v1686_v52   ;;  %2976 = vpow2.f32 %v1983_v10 }
 0x68d   : > { %2978 = vpow2.f32 %v1987_v61 }
 0x68e   : > { %2980 = vpow2.f32 %v1991_v35 }
 0x690   : > { %1706 = vperm.xlu1 %2923, %v1687_v56  }
 0x691   : > { %v3535_v29 = vpop.eup %2966 }
 0x692   : > { %2004 = vperm.xlu0 %2924, %v3535_v29   ;;  %v3540_v23 = vpop.eup %2968 }
 0x693   : > { %v3544_v14 = vpop.eup %2970 }
 0x694   : > { %1709 = vperm.xlu1 %2923, %v1688_v1   ;;  %v3547_v9 = vpop.eup %2972 }
 0x695   : > { %v3550_v16 = vpop.eup %2974 }
 0x696   : > { %2013 = vperm.xlu0 %2924, %v3540_v23   ;;  %v3554_v42 = vpop.eup %2976 }
 0x697   : > { %v3557_v17 = vpop.eup %2978 }
 0x698   : > { %1712 = vperm.xlu1 %2923, %v1689_v13   ;;  %v3560_v55 = vpop.eup %2980 }
 0x69a   : > { %2019 = vperm.xlu0 %2924, %v3544_v14  }
 0x69c   : > { %2925 = vset.pattern.permute.xlu1 %v3034_v44 }
 0x69d   : > { %2007 = vperm.xlu1 %2925, %v3547_v9  }
 0x69e   : > { %2025 = vperm.xlu0 %2924, %v3550_v16  }
 0x6a1   : > { %2010 = vperm.xlu1 %2925, %v3554_v42  }
 0x6a5   : > { %2016 = vperm.xlu1 %2925, %v3557_v17  }
 0x6a9   : > { %2022 = vperm.xlu1 %2925, %v3560_v55  }
 0x6ff   : > { %v1695_v44 = vpop.permute.xlu1 %1694  ;;  %v1692_v18 = vpop.permute.xlu0 %1691 }
 0x700   : > { %v1721_v33 = vrot.slane %v1695_v44, %v3369_v47  ;;  %v1717_v62 = vrot.slane %v1692_v18, %v3369_v47 }
 0x702   : > { %v1746_v37 = vsel %vm1408_vm14, %v1721_v33, %v1717_v62 }
 0x703   : > { %v1698_v19 = vpop.permute.xlu1 %1697 }
 0x704   : > { %v1725_v34 = vrot.slane %v1698_v19, %v3369_v47 }
 0x706   : > { %v1747_v38 = vsel %vm1410_vm15, %v1725_v34, %v1746_v37  ;;  %v2937_v37 = vld [vmem:[%s3775_s21 + $0x8] sm:$0xff]  }
 0x707   : > { %v1701_v20 = vpop.permute.xlu1 %1700 }
 0x708   : > { %v1729_v36 = vrot.slane %v1701_v20, %v3369_v47 }
 0x70a   : > { %v1748_v52 = vsel %vm1412_vm0, %v1729_v36, %v1747_v38 }
 0x70b   : > { %v1704_v21 = vpop.permute.xlu1 %1703 }
 0x70c   : > { %v1733_v26 = vrot.slane %v1704_v21, %v3369_v47 }
 0x70e   : > { %v1749_v53 = vsel %vm1414_vm5, %v1733_v26, %v1748_v52 }
 0x70f   : > { %v1707_v32 = vpop.permute.xlu1 %1706 }
 0x710   : > { %v1737_v63 = vrot.slane %v1707_v32, %v3369_v47 }
 0x711   : > { %v2005_v24 = vpop.permute.xlu0 %2004 }
 0x712   : > { %v1750_v39 = vsel %vm1416_vm6, %v1737_v63, %v1749_v53  ;;  %v2030_v1 = vrot.slane %v2005_v24, %v3369_v47 }
 0x713   : > { %v1710_v31 = vpop.permute.xlu1 %1709 }
 0x714   : > { %v1741_v48 = vrot.slane %v1710_v31, %v3369_v47  ;;  %v2936_v31 = vld [vmem:[%s3775_s21] sm:$0xff]  }
 0x715   : > { %v2014_v0 = vpop.permute.xlu0 %2013 }
 0x716   : > { %v1751_v58 = vsel %vm1418_vm7, %v1741_v48, %v1750_v39  ;;  %v2042_v61 = vrot.slane %v2014_v0, %v3369_v47 }
 0x717   : > { %v1713_v54 = vpop.permute.xlu1 %1712 }
 0x718   : > { %v1745_v57 = vrot.slane %v1713_v54, %v3369_v47 }
 0x719   : > { %v2020_v43 = vpop.permute.xlu0 %2019 }
 0x71a   : > { %v1752_v50 = vsel %vm1420_vm8, %v1745_v57, %v1751_v58  ;;  %v2050_v21 = vrot.slane %v2020_v43, %v3369_v47 }
 0x71b   : > { %v1753_v22 = vpack.c.b16 %v1752_v50, %v1752_v50 }
 0x71c   : > { %v2008_v56 = vpop.permute.xlu1 %2007 }
 0x71d   : > { %2849 = vmatmul.mubr.msk.bf16.vlgmr.msra.gmra.mrb[4].mxu0 %vm880_vm3, %v1753_v22  ;;  %v2034_v51 = vrot.slane %v2008_v56, %v3369_v47  ;;  %v2026_v19 = vpop.permute.xlu0 %2025 }
 0x71e   : > { %2856 = vmatprep.mubr.msk.bf16.mxu0 %vm3030_vm4, %v3029_v15  ;;  %v2058_v33 = vrot.slane %v2026_v19, %v3369_v47  ;;  %2853 = vmatpush3.bf16.msra.mxu0 %v2936_v31 }
 0x71f   : > { %v2059_v10 = vsel %vm1408_vm14, %v2034_v51, %v2030_v1  ;;  %2854 = vmatprep.subr.bf16.mxu0 %v3029_v15 }
 0x720   : > { %v2011_v5 = vpop.permute.xlu1 %2010 }
 0x721   : > { %v2038_v6 = vrot.slane %v2011_v5, %v3369_v47 }
 0x722   : > { %2855 = vmatpush3.bf16.msra.mxu0 %v2937_v37 }
 0x723   : > { %v2060_v49 = vsel %vm1410_vm15, %v2038_v6, %v2059_v10  ;;  %2860 = vmatprep.subr.bf16.mxu0 %v3029_v15 }
 0x724   : > { %v2017_v13 = vpop.permute.xlu1 %2016  ;;  %v2061_v44 = vsel %vm1412_vm0, %v2042_v61, %v2060_v49 }
 0x725   : > { %v2046_v35 = vrot.slane %v2017_v13, %v3369_v47 }
 0x727   : > { %v2062_v20 = vsel %vm1414_vm5, %v2046_v35, %v2061_v44 }
 0x728   : > { %v2023_v18 = vpop.permute.xlu1 %2022  ;;  %v2063_v62 = vsel %vm1416_vm6, %v2050_v21, %v2062_v20 }
 0x729   : > { %v2054_v32 = vrot.slane %v2023_v18, %v3369_v47 }
 0x72b   : > { %v2064_v34 = vsel %vm1418_vm7, %v2054_v32, %v2063_v62 }
 0x72c   : > { %v2065_v36 = vsel %vm1420_vm8, %v2058_v33, %v2064_v34 }
 0x72d   : > { %v2067_v26 = vsel %vm880_vm3, %v2065_v36, 0.0 }
 0x72e   : > { %2068 = vadd.xlane.f32.xlu1 %v2067_v26 }
 0x7bb   : > { %v2069_v63 = vpop.xlane.xlu1 %2068 }
 0x7bc   : > { %2982 = vrcp.f32 %v2069_v63 }
 0x7c6   : > { %v2983_v38 = vpop.eup %2982 }
 0x7c7   : > { %v2075_v24 = vrot.slane %v2983_v38, %v3278_v2  ;;  %v2079_v48 = vrot.slane %v2983_v38, %v3299_v59  ;;  %v2083_v52 = vrot.slane %v2983_v38, %v3302_v60  ;;  %v2087_v50 = vrot.slane %v2983_v38, %v3310_v3 }
 0x7c8   : > { %v2091_v22 = vrot.slane %v2983_v38, %v3313_v4  ;;  %v2099_v3 = vrot.slane %v2983_v38, %v3323_v8 }
 0x7c9   : > { %v2112_v53 = vmul.f32 %v3535_v29, %v2075_v24  ;;  %v2113_v54 = vmul.f32 %v3547_v9, %v2079_v48  ;;  %v2114_v58 = vmul.f32 %v3554_v42, %v2083_v52  ;;  %v2115_v60 = vmul.f32 %v3540_v23, %v2087_v50  ;;  %v2938_v50 = vld [vmem:[%s3775_s21 + $0x10] sm:$0xff]  }
 0x7ca   : > { %v2095_v29 = vrot.slane %v2983_v38, %v3320_v7  ;;  %v2116_v42 = vmul.f32 %v3557_v17, %v2091_v22  ;;  %v2103_v23 = vrot.slane %v2983_v38, %v3330_v11 }
 0x7cb   : > { %v2120_v39 = vmul.f32 %v2112_v53, %v3477_v27  ;;  %v2121_v57 = vmul.f32 %v2113_v54, %v3474_v25  ;;  %v2122_v59 = vmul.f32 %v2114_v58, %v3480_v28  ;;  %v2123_v25 = vmul.f32 %v2115_v60, %v3490_v45 }
 0x7cc   : > { %v2124_v1 = vmul.f32 %v2116_v42, %v3499_v40  ;;  %v2117_v28 = vmul.f32 %v3544_v14, %v2095_v29  ;;  %v2118_v45 = vmul.f32 %v3560_v55, %v2099_v3  ;;  %v2119_v10 = vmul.f32 %v3550_v16, %v2103_v23  ;;  %v2752_v42 = vld [vmem:[%s721_s23] ss:$0 sm:$0xff] }
 0x7cd   : > { %v2128_v0 = vpack.c.bf16 %v2120_v39, %v2120_v39  ;;  %v2129_v56 = vpack.c.bf16 %v2121_v57, %v2121_v57  ;;  %v2130_v27 = vpack.c.bf16 %v2122_v59, %v2122_v59  ;;  %v2131_v4 = vpack.c.bf16 %v2123_v25, %v2123_v25  ;;  %v2939_v59 = vld [vmem:[%s3775_s21 + $0x18] sm:$0xff]   ;;  %v2990_v23 = vld [vmem:[#allocation2] sm:$0xff] }
 0x7ce   : > { %v2132_v7 = vpack.c.bf16 %v2124_v1, %v2124_v1  ;;  %v2125_v43 = vmul.f32 %v2117_v28, %v3506_v12  ;;  %v2126_v8 = vmul.f32 %v2118_v45, %v3517_v30  ;;  %v2127_v14 = vmul.f32 %v2119_v10, %v3527_v46 }
 0x7cf   : > { %v2144_v2 = vunpack.c.l.b16 %v2128_v0  ;;  %v2145_v9 = vunpack.c.l.b16 %v2129_v56  ;;  %v2146_v51 = vunpack.c.l.b16 %v2130_v27  ;;  %v2147_v5 = vunpack.c.l.b16 %v2131_v4 }
 0x7d0   : > { %v2148_v17 = vunpack.c.l.b16 %v2132_v7  ;;  %v2133_v6 = vpack.c.bf16 %v2125_v43, %v2125_v43  ;;  %v2134_v49 = vpack.c.bf16 %v2126_v8, %v2126_v8  ;;  %v2135_v61 = vpack.c.bf16 %v2127_v14, %v2127_v14 }
 0x7d1   : > { %2153 = vperm.xlu0 %2924, %v2144_v2  }
 0x7d2   : > { %v2149_v40 = vunpack.c.l.b16 %v2133_v6  ;;  %v2150_v11 = vunpack.c.l.b16 %v2134_v49  ;;  %v2151_v13 = vunpack.c.l.b16 %v2135_v61  ;;  %v2941_v49 = vld [vmem:[%s3190_s8 + $0x8] sm:$0xff]  }
 0x7d5   : > { %2156 = vperm.xlu0 %2924, %v2145_v9  }
 0x7d9   : > { %2159 = vperm.xlu0 %2924, %v2146_v51  }
 0x7dd   : > { %2162 = vperm.xlu0 %2924, %v2147_v5  }
 0x7e1   : > { %2165 = vperm.xlu0 %2924, %v2148_v17  }
 0x7e5   : > { %2168 = vperm.xlu0 %2924, %v2149_v40   ;;  %v2940_v40 = vld [vmem:[%s3190_s8] sm:$0xff]  }
 0x7e9   : > { %2171 = vperm.xlu0 %2924, %v2150_v11  }
 0x7ed   : > { %2174 = vperm.xlu0 %2924, %v2151_v13  }
 0x7f0   : > { %v1794_v12 = vpop.f32.mrb[4].mxu0 }
 0x7f1   : > { %v1800_v55 = vpack.c.bf16 %v1794_v12, %v1794_v12  ;;  %v2850_v35 = vpop.f32.mrb[5].mxu0  ;;  %2217 = vrot.lane.b32.xlu0 %v3260_v41, %s3035_s24  ;;  %v2757_v12 = vld [vmem:[%s3776_s1] ss:$0 sm:$0xff] }
 0x7f2   : > { %v1797_v30 = vpop.f32.mrb[6].mxu0  ;;  %v2758_v35 = vld [vmem:[%s727_s7] ss:$0 sm:$0xff] }
 0x7f3   : > { %v2851_v44 = vpop.f32.mrb[7].mxu0  ;;  %2857 = vmatmul.mubr.msk.bf16.vlgmr.msra.gmra.mrb[8].mxu0 %vm755_vm1, %v1800_v55 }
 0x7f4   : > { %2862 = vmatprep.mubr.msk.bf16.mxu0 %vm3030_vm4, %v3029_v15 }
 0x850   : > { %v2154_v46 = vpop.permute.xlu0 %2153 }
 0x851   : > { %v2179_v62 = vrot.slane %v2154_v46, %v3369_v47 }
 0x854   : > { %v2157_v16 = vpop.permute.xlu0 %2156 }
 0x855   : > { %v2183_v32 = vrot.slane %v2157_v16, %v3369_v47  ;;  %v2942_v16 = vld [vmem:[%s3199_s22] sm:$0xff]  }
 0x856   : > { %2883 = vmatpush3.bf16.msra.mxu1 %v2942_v16 }
 0x857   : > { %v2208_v26 = vsel %vm1408_vm14, %v2183_v32, %v2179_v62  ;;  %2884 = vmatprep.subr.bf16.mxu1 %v3029_v15 }
 0x858   : > { %v2160_v19 = vpop.permute.xlu0 %2159 }
 0x859   : > { %v2187_v33 = vrot.slane %v2160_v19, %v3369_v47  ;;  %v2943_v19 = vld [vmem:[%s3199_s22 + $0x8] sm:$0xff]  }
 0x85a   : > { %2885 = vmatpush3.bf16.msra.mxu1 %v2943_v19 }
 0x85b   : > { %v2209_v37 = vsel %vm1410_vm15, %v2187_v33, %v2208_v26  ;;  %2886 = vmatprep.subr.bf16.mxu1 %v3029_v15 }
 0x85c   : > { %v2163_v20 = vpop.permute.xlu0 %2162 }
 0x85d   : > { %v2191_v41 = vrot.slane %v2163_v20, %v3369_v47  ;;  %v2944_v20 = vld [vmem:[%s3199_s22 + $0x10] sm:$0xff]  }
 0x85e   : > { %2887 = vmatpush3.bf16.msra.mxu1 %v2944_v20 }
 0x85f   : > { %v2210_v38 = vsel %vm1412_vm0, %v2191_v41, %v2209_v37  ;;  %2888 = vmatprep.subr.bf16.mxu1 %v3029_v15 }
 0x860   : > { %v2166_v21 = vpop.permute.xlu0 %2165 }
 0x861   : > { %v2195_v36 = vrot.slane %v2166_v21, %v3369_v47  ;;  %v2945_v21 = vld [vmem:[%s3199_s22 + $0x18] sm:$0xff]  }
 0x862   : > { %2889 = vmatpush3.bf16.msra.mxu1 %v2945_v21 }
 0x863   : > { %v2211_v48 = vsel %vm1414_vm5, %v2195_v36, %v2210_v38 }
 0x864   : > { %v2169_v18 = vpop.permute.xlu0 %2168 }
 0x865   : > { %v2199_v31 = vrot.slane %v2169_v18, %v3369_v47  ;;  %v2759_v18 = vld [vmem:[%s735_s9] ss:$0 sm:$0xff] }
 0x867   : > { %v2212_v53 = vsel %vm1416_vm6, %v2199_v31, %v2211_v48 }
 0x868   : > { %v2172_v34 = vpop.permute.xlu0 %2171 }
 0x869   : > { %v2203_v63 = vrot.slane %v2172_v34, %v3369_v47 }
 0x86b   : > { %v2213_v54 = vsel %vm1418_vm7, %v2203_v63, %v2212_v53 }
 0x86c   : > { %v2175_v24 = vpop.permute.xlu0 %2174 }
 0x86d   : > { %v2207_v52 = vrot.slane %v2175_v24, %v3369_v47 }
 0x86f   : > { %v2214_v39 = vsel %vm1420_vm8, %v2207_v52, %v2213_v54 }
 0x870   : > { %v2218_v57 = vpop.permute.xlu0 %2217  ;;  %v2215_v0 = vpack.c.b16 %v2214_v39, %v2214_v39 }
 0x871   : > { %v2223_v58 = vsel %vm893_vm2, %v2218_v57, 0 }
 0x872   : > { %2861 = vmatpush3.bf16.msra.mxu0 %v2223_v58 }
 0x873   : > { %2866 = vmatprep.subr.bf16.mxu0 %v3029_v15 }
 0x875   : > { %2863 = vmatmul.mubr.msk.bf16.vlgmr.msra.gmra.mrb[12].mxu0 %vm880_vm3, %v2215_v0 }
 0x876   : > { %2867 = vmatpush3.bf16.msra.mxu0 %v2938_v50  ;;  %2870 = vmatprep.mubr.msk.bf16.mxu0 %vm3030_vm4, %v3029_v15 }
 0x877   : > { %2868 = vmatprep.subr.bf16.mxu0 %v3029_v15 }
 0x87a   : > { %2869 = vmatpush3.bf16.msra.mxu0 %v2939_v59 }
 0x87b   : > { %2874 = vmatprep.subr.bf16.mxu0 %v3029_v15 }
 0x8c6   : > { %v1850_v47 = vpop.f32.mrb[8].mxu0 }
 0x8c7   : > { %v2858_v22 = vpop.f32.mrb[9].mxu0  ;;  %v1862_v3 = vadd.f32 %v2752_v42, %v1850_v47  ;;  %v2763_v42 = vld [vmem:[%s743_s17] ss:$0 sm:$0xff] }
 0x8c8   : > { %v1853_v2 = vpop.f32.mrb[10].mxu0 }
 0x8c9   : > { %v2859_v56 = vpop.f32.mrb[11].mxu0 }
 0x8ca   : > { %v3036_v56 = vmov -1.0  }
 0x948   : > { %v2259_v60 = vpop.f32.mrb[12].mxu0 }
 0x949   : > { %v2265_v29 = vpack.c.bf16 %v2259_v60, %v2259_v60  ;;  %v2864_v9 = vpop.f32.mrb[13].mxu0 }
 0x94a   : > { %v2262_v27 = vpop.f32.mrb[14].mxu0 }
 0x94b   : > { %v2865_v25 = vpop.f32.mrb[15].mxu0  ;;  %2871 = vmatmul.mubr.msk.bf16.vlgmr.msra.gmra.mrb[16].mxu0 %vm755_vm1, %v2265_v29 }
 0x94c   : > { %2878 = vmatprep.mubr.msk.bf16.mxu0 %vm3030_vm4, %v3029_v15  ;;  %2875 = vmatpush3.bf16.msra.mxu0 %v2940_v40 }
 0x94d   : > { %2876 = vmatprep.subr.bf16.mxu0 %v3029_v15 }
 0x950   : > { %2877 = vmatpush3.bf16.msra.mxu0 %v2941_v49 }
 0xa1e   : > { %v2315_v51 = vpop.f32.mrb[16].mxu0 }
 0xa1f   : > { %v2321_v4 = vadd.f32 %v2315_v51, %v1862_v3  ;;  %v2872_v1 = vpop.f32.mrb[17].mxu0 }
 0xa20   : > { %v2318_v28 = vpop.f32.mrb[18].mxu0 }
 0xa21   : > { %v3661_v5 = vadd.f32 %v2990_v23, %v2321_v4  ;;  %v2873_v7 = vpop.f32.mrb[19].mxu0 }
 0xa23   : > { %v2325_v43 = vsel %vm755_vm1, %v3661_v5, 0.0 }
 0xa24   : > { %2326 = vadd.xlane.f32.xlu1 %v2325_v43 }
 0xab1   : > { %v2327_v45 = vpop.xlane.xlu1 %2326 }
 0xab2   : > { %v2328_v17 = vmul.f32 0.03125, %v2327_v45 }
 0xab4   : > { %v2329_v6 = vsub.f32 %v3661_v5, %v2328_v17 }
 0xab6   : > { %v2330_v8 = vmul.f32 %v2329_v6, %v2329_v6 }
 0xab8   : > { %v2331_v10 = vsel %vm755_vm1, %v2330_v8, 0.0 }
 0xab9   : > { %2332 = vadd.xlane.f32.xlu0 %v2331_v10 }
 0xb46   : > { %v2333_v14 = vpop.xlane.xlu0 %2332 }
 0xb47   : > { %v2334_v11 = vmul.f32 0.03125, %v2333_v14 }
 0xb49   : > { %v2335_v61 = vadd.f32 1e-05, %v2334_v11 }
 0xb4b   : > { %2984 = vrsqrt.f32 %v2335_v61 }
 0xb55   : > { %v2985_v13 = vpop.eup %2984 }
 0xb56   : > { %v2337_v55 = vmul.f32 %v2985_v13, %v2329_v6 }
 0xb58   : > { %v2344_v30 = vmul.f32 %v2757_v12, %v2337_v55 }
 0xb5a   : > { %v2351_v44 = vadd.f32 %v2758_v35, %v2344_v30 }
 0xb5c   : > { %v2356_v46 = vpack.c.bf16 %v2351_v44, %v2351_v44 }
 0xb5e   : > { %2879 = vmatmul.mubr.msk.bf16.vlgmr.msra.gmra.mrb[20].mxu0 %vm755_vm1, %v2356_v46 }
 0xc31   : > { %v2413_v32 = vpop.f32.mrb[20].mxu0 }
 0xc32   : > { %v2414_v33 = vadd.f32 %v2759_v18, %v2413_v32  ;;  %v2880_v62 = vpop.f32.mrb[21].mxu0 }
 0xc33   : > { %v2416_v41 = vpop.f32.mrb[22].mxu0 }
 0xc34   : > { %v2420_v34 = vmul.f32 0.70710677, %v2414_v33  ;;  %v2881_v36 = vpop.f32.mrb[23].mxu0  ;;  %v2419_v29 = vmul.f32 0.5, %v2414_v33 }
 0xc36   : > { %v2423_v26 = vand.u32 2147483647, %v2420_v34  ;;  %vm2421_vm2 = vcmp.ge.f32.partialorder %v2420_v34, 0.0 }
 0xc37   : > { %v2422_v59 = vsel %vm2421_vm2, 1.0, %v3036_v56 }
 0xc38   : > { %v2424_v31 = vmul.f32 0.3275911, %v2423_v26  ;;  %v2437_v63 = vsub.f32 0.0, %v2423_v26 }
 0xc3a   : > { %v2425_v37 = vadd.f32 1.0, %v2424_v31  ;;  %v2438_v24 = vmul.f32 %v2437_v63, %v2423_v26 }
 0xc3c   : > { %2986 = vrcp.f32 %v2425_v37  ;;  %v2439_v52 = vmul.f32 1.442695, %v2438_v24 }
 0xc3e   : > { %2988 = vpow2.f32 %v2439_v52 }
 0xc46   : > { %v2987_v38 = vpop.eup %2986 }
 0xc47   : > { %v2428_v15 = vmul.f32 1.0614054, %v2987_v38 }
 0xc48   : > { %v2989_v47 = vpop.eup %2988 }
 0xc49   : > { %v2429_v48 = vadd.f32 -1.4531521, %v2428_v15 }
 0xc4b   : > { %v2430_v53 = vmul.f32 %v2987_v38, %v2429_v48 }
 0xc4d   : > { %v2431_v54 = vadd.f32 1.4214138, %v2430_v53 }
 0xc4f   : > { %v2432_v39 = vmul.f32 %v2987_v38, %v2431_v54 }
 0xc51   : > { %v2433_v57 = vadd.f32 -0.28449672, %v2432_v39 }
 0xc53   : > { %v2434_v58 = vmul.f32 %v2987_v38, %v2433_v57 }
 0xc55   : > { %v2435_v50 = vadd.f32 0.2548296, %v2434_v58 }
 0xc57   : > { %v2436_v0 = vmul.f32 %v2987_v38, %v2435_v50 }
 0xc59   : > { %v2441_v22 = vmul.f32 %v2989_v47, %v2436_v0 }
 0xc5b   : > { %v2442_v2 = vsub.f32 1.0, %v2441_v22 }
 0xc5d   : > { %v2443_v60 = vmul.f32 %v2442_v2, %v2422_v59 }
 0xc5f   : > { %v2444_v9 = vadd.f32 1.0, %v2443_v60 }
 0xc61   : > { %v2445_v27 = vmul.f32 %v2444_v9, %v2419_v29 }
 0xc63   : > { %v2454_v25 = vpack.c.bf16 %v2445_v27, %v2445_v27 }
 0xc65   : > { %2891 = vmatmul.mubr.msk.bf16.vlgmr.msra.gmra.mrb[16].mxu1 %vm1175_vm13, %v2454_v25 }
 0xd38   : > { %v2523_v3 = vpop.f32.mrb[16].mxu1 }
 0xd39   : > { %v2524_v51 = vadd.f32 %v2763_v42, %v2523_v3  ;;  %v2892_v4 = vpop.f32.mrb[17].mxu1 }
 0xd3a   : > { %v2526_v1 = vpop.f32.mrb[18].mxu1 }
 0xd3b   : > { %v2529_v28 = vadd.f32 %v2524_v51, %v3661_v5  ;;  %v2893_v23 = vpop.f32.mrb[19].mxu1 }
 0xd3d   : > { %2530 = vst.msk [vmem:[#allocation2] sm:$0xff] %vm755_vm1, %v2529_v28 }
 0xd3e   : > { %3004 = shalt.err (!%p3001_p12)
}
 0xd3f   : > { %s3777_s30 = sld [smem:[#allocation16_spill]] }
 0xd45   : > { %s3005_s5 = scalar_lea.hbm %s3777_s30, 128 }
 0xd46   : > { %p3006_p13 = scmp.ne.s32.totalorder %s3777_s30, %s3005_s5  ;;  %p3011_p2 = scmp.lt.u32.totalorder %s3005_s5, %s3777_s30 }
 0xd48   : > { %p3007_p0 = pnand %p3006_p13, %p2899_p5 }
 0xd4a   : > { %p3008_p1 = pneg %p3007_p0 }
 0xd4c   : > { %p3013_p3 = pnand %p3011_p2, %p3008_p1 }
 0xd4e   : > { %3016 = shalt.err (!%p3013_p3)
}
 0xd4f   : > { %2896 = dma.vmem_to_hbm [thread:$0]  (%p2899_p5), %s2539_s18, 128, %s3777_s30, [#allocation3]  }
 0xd50   : > { %3022 = dma.done.wait (%p2899_p5), [#allocation3], 128  }
 0xd51   : > { %3024 = vsyncadd (%p2899_p5), [#allocation3], 4294967168 }
 0xd52 PF: > { %s3778_s2 = sld [smem:[#allocation5_spill]] }
 0xd58   : > { %s28_s24 = sadd.s32 1, %s3778_s2  }
 0xd59   : > { %p25_p4 = scmp.ge.s32.totalorder %s28_s24, 4  }
 0xd5b   :  { %27 = sbr.rel (!%p25_p4) target bundleno = 12 (0xc), region = 158 }
 0xd62   :  { %2551 = vsyncpa [#allocation3], 1 }
 0xd63   :  { %2553 = vsyncpa [#allocation3 + $0x1], 1 }

</bundles_post_ra>
